<compile_context>
chip_gen: v7x
topology: tpu7x:2x2x1
jax: 0.10.0
libtpu: 0.0.40
codegen_flags: <defaults>
</compile_context>

<pallas_src>
import functools
import math

import jax
import jax.numpy as jnp
from jax.experimental import pallas as pl
from jax.experimental.pallas import tpu as pltpu

# ----------------------------- small config ---------------------------------
VOCAB = 100
PAD_ID = 1
HIDDEN = 128            # multiple of 128 -> lane-dense
HEADS = 2
HEAD_DIM = HIDDEN // HEADS
HEAD_PAD = 128          # per-head q/k/v padded to a full 128-lane tile
FFN = 256               # multiple of 128
NUM_LAYERS = 2
EPS = 1e-5
NEG_INF = -1e9

W_QKV = HEADS * 3 * HEAD_PAD    # fused, padded QKV output width
W_O = HEADS * HEAD_PAD          # padded attention-output width


# ------------------------------ kernel helpers -------------------------------
def _gelu(x):
    # TODO(synk): HF SpeechT5 uses exact erf GELU; tanh approximation used here.
    return 0.5 * x * (1.0 + jnp.tanh(0.7978845608028654 * (x + 0.044715 * x * x * x)))


def _layernorm(x, g, b, eps):
    # f32 statistics for stability.
    mu = jnp.mean(x, axis=-1, keepdims=True)
    var = jnp.mean(jnp.square(x - mu), axis=-1, keepdims=True)
    return (x - mu) * jax.lax.rsqrt(var + eps) * g + b


def _mm(a_f32, w_bf16):
    # Activations cast to bf16 at the MXU boundary; weights are PRE-cast bf16;
    # accumulate in f32.
    return jnp.dot(a_f32.astype(jnp.bfloat16), w_bf16,
                   preferred_element_type=jnp.float32)


# ------------------------------- fused kernel --------------------------------
def _textt5_kernel(x0_ref, bias_ref, encg_ref, encb_ref,
                   wqkv_ref, bqkv_ref, wo_ref, bo_ref,
                   ln1g_ref, ln1b_ref, w1_ref, b1_ref,
                   w2_ref, b2_ref, ln2g_ref, ln2b_ref,
                   o_ref, h_ref, *, heads, head_dim, eps):
    """grid = (batch_block, layer). One post-norm encoder layer per step; the
    hidden state stays resident in the h_ref VMEM scratch across layers."""
    layer = pl.program_id(1)
    BB, T, D = x0_ref.shape
    M = BB * T                       # batch folded into the matmul M dimension
    HP = HEAD_PAD
    scale = 1.0 / math.sqrt(head_dim)

    # ---- prenet (fused): pre-encoder LayerNorm, only at layer 0 ----
    @pl.when(layer == 0)
    def _():
        x = x0_ref[...].astype(jnp.float32).reshape(M, D)
        h_ref[...] = _layernorm(x, encg_ref[...], encb_ref[...], eps)

    h = h_ref[...]                   # (M, D) f32
    bias = bias_ref[...]             # (M, M) f32, block-diag batch + key padding

    # ---- fused padded-head QKV projection: single matmul, M = BB*T rows ----
    qkv = _mm(h, wqkv_ref[...]) + bqkv_ref[...]            # (M, heads*3*128) f32

    # ---- multi-head attention: 128-lane-aligned head slices (no relayouts),
    #      scores computed on the folded slab with the block-diagonal mask ----
    # TODO(synk): SpeechT5 also adds a learned relative-position bias to the
    # attention scores; omitted here (standard masked softmax attention only).
    head_outs = []
    for hh in range(heads):
        base = hh * 3 * HP
        qh = qkv[:, base:base + HP].astype(jnp.bfloat16)
        kh = qkv[:, base + HP:base + 2 * HP].astype(jnp.bfloat16)
        vh = qkv[:, base + 2 * HP:base + 3 * HP].astype(jnp.bfloat16)
        # contract last axes of q and k -> no explicit k transpose relayout
        s = jax.lax.dot_general(qh, kh, (((1,), (1,)), ((), ())),
                                preferred_element_type=jnp.float32)
        s = s * scale + bias                                # (M, M) f32
        m = jnp.max(s, axis=-1, keepdims=True)
        p = jnp.exp(s - m)
        l = jnp.sum(p, axis=-1, keepdims=True)
        p = p * pl.reciprocal(l, approx=True)               # divide on the EUP
        head_outs.append(jnp.dot(p.astype(jnp.bfloat16), vh,
                                 preferred_element_type=jnp.float32))
    # concat at a 128-lane boundary -> cheap vreg stacking, no XLU shuffle
    attn = jnp.concatenate(head_outs, axis=-1)              # (M, heads*128)

    # ---- output projection (padded rows are zero) + residual + LayerNorm ----
    attn = _mm(attn, wo_ref[...]) + bo_ref[...]
    x = _layernorm(h + attn, ln1g_ref[...], ln1b_ref[...], eps)

    # ---- feed-forward + residual + LayerNorm ----
    ff = _gelu(_mm(x, w1_ref[...]) + b1_ref[...])
    ff = _mm(ff, w2_ref[...]) + b2_ref[...]
    y = _layernorm(x + ff, ln2g_ref[...], ln2b_ref[...], eps)

    h_ref[...] = y

    @pl.when(layer == pl.num_programs(1) - 1)
    def _():
        o_ref[...] = y.reshape(BB, T, D).astype(o_ref.dtype)


# ------------------------------ pallas wrapper --------------------------------
def sinusoidal_pe(T, D):
    """Interleaved sin/cos positional encoding (constant table)."""
    pos = jnp.arange(T, dtype=jnp.float32)[:, None]
    i = jnp.arange(0, D, 2, dtype=jnp.float32)[None, :]
    ang = pos * jnp.exp(-math.log(10000.0) * i / D)
    pe = jnp.zeros((T, D), jnp.float32)
    pe = pe.at[:, 0::2].set(jnp.sin(ang))
    pe = pe.at[:, 1::2].set(jnp.cos(ang))
    return pe


def textt5_pallas_forward(packed, input_ids, attention_mask, *, batch_block=None):
    """TextT5.forward: returns (last_hidden_state [B,T,D], attention_mask [B,T])."""
    B, T = input_ids.shape
    D, F, L = HIDDEN, FFN, NUM_LAYERS

    if batch_block is None:
        # Fold enough batch elements into one grid step to feed the MXU >=128
        # rows; with larger B this leaves >=2 "parallel" steps for megacore.
        batch_block = min(B, max(1, (128 + T - 1) // T))
        while B % batch_block != 0:
            batch_block -= 1
    assert B % batch_block == 0
    BB = batch_block
    nb = B // BB
    M = BB * T

    # ----- XLA-side prep: embedding gather + scaled positional add -----
    emb = jnp.take(packed["embed"], input_ids, axis=0)          # [B, T, D]
    pe = sinusoidal_pe(T, D)
    x0 = emb + packed["pos_alpha"] * pe                         # [B, T, D] f32

    # Block-diagonal additive attention bias over each folded batch block:
    # query (bq, i) may attend key (bk, j) iff bq == bk and attention_mask[bk, j].
    key_ok = (attention_mask > 0).reshape(nb, BB, T)
    same_b = jnp.eye(BB, dtype=bool)
    ok = same_b[None, :, None, :, None] & key_ok[:, None, None, :, :]
    ok = jnp.broadcast_to(ok, (nb, BB, T, BB, T)).reshape(nb, M, M)
    bias = jnp.where(ok, 0.0, NEG_INF).astype(jnp.float32)      # [nb, M, M]

    per_b3 = lambda b, l: (b, 0, 0)      # batch-block indexed, layer-invariant
    per_l3 = lambda b, l: (l, 0, 0)      # layer-indexed (weight stacks)
    const2 = lambda b, l: (0, 0)

    # Advisory cost estimate (lets XLA schedule the gather / mask build sanely).
    flops = L * (2 * B * T * D * W_QKV          # fused QKV
                 + nb * HEADS * 4 * M * M * HEAD_PAD   # scores + P@V
                 + 2 * B * T * W_O * D          # out proj
                 + 4 * B * T * D * F)           # FFN
    transcendentals = L * (nb * HEADS * M * M + B * T * F)
    bytes_accessed = (8 * B * T * D + 4 * nb * M * M
                      + L * 2 * (D * W_QKV + W_O * D + 2 * D * F)
                      + L * 4 * (W_QKV + 5 * D + F))

    out = pl.pallas_call(
        functools.partial(_textt5_kernel, heads=HEADS, head_dim=HEAD_DIM, eps=EPS),
        out_shape=jax.ShapeDtypeStruct((B, T, D), jnp.float32),
        grid=(nb, L),
        in_specs=[
            pl.BlockSpec((BB, T, D), per_b3),            # x0 (emb + alpha*PE)
            pl.BlockSpec((None, M, M), per_b3),          # attention bias
            pl.BlockSpec((1, D), const2),                # encoder pre-LN gamma
            pl.BlockSpec((1, D), const2),                # encoder pre-LN beta
            pl.BlockSpec((None, D, W_QKV), per_l3),      # fused padded Wqkv (bf16)
            pl.BlockSpec((None, 1, W_QKV), per_l3),      # fused padded bqkv
            pl.BlockSpec((None, W_O, D), per_l3),        # padded Wo (bf16)
            pl.BlockSpec((None, 1, D), per_l3),          # bo
            pl.BlockSpec((None, 1, D), per_l3),          # ln1 gamma
            pl.BlockSpec((None, 1, D), per_l3),          # ln1 beta
            pl.BlockSpec((None, D, F), per_l3),          # W1 (bf16)
            pl.BlockSpec((None, 1, F), per_l3),          # b1
            pl.BlockSpec((None, F, D), per_l3),          # W2 (bf16)
            pl.BlockSpec((None, 1, D), per_l3),          # b2
            pl.BlockSpec((None, 1, D), per_l3),          # ln2 gamma
            pl.BlockSpec((None, 1, D), per_l3),          # ln2 beta
        ],
        out_specs=pl.BlockSpec((BB, T, D), per_b3),
        scratch_shapes=[pltpu.VMEM((M, D), jnp.float32)],        # resident hidden state
        compiler_params=pltpu.CompilerParams(
            dimension_semantics=("parallel", "arbitrary"),
            vmem_limit_bytes=32 * 1024 * 1024),
        cost_estimate=pl.CostEstimate(flops=flops,
                                      transcendentals=transcendentals,
                                      bytes_accessed=bytes_accessed),
    )(x0, bias,
      packed["enc_ln_g"], packed["enc_ln_b"],
      packed["wqkv"], packed["bqkv"], packed["wo"], packed["bo"],
      packed["ln1_g"], packed["ln1_b"], packed["w1"], packed["b1"],
      packed["w2"], packed["b2"], packed["ln2_g"], packed["ln2_b"])

    # Dropout layers are no-ops in eval mode.
    return out, attention_mask


# ------------------------------ parameters ------------------------------------
def init_params(key):
    def nrm(k, shape, scale=0.05):
        return scale * jax.random.normal(k, shape, jnp.float32)

    keys = iter(jax.random.split(key, 2 + 6 * NUM_LAYERS))
    params = {}
    emb = nrm(next(keys), (VOCAB, HIDDEN), scale=0.02)
    params["embed"] = emb.at[PAD_ID].set(0.0)              # padding_idx row = 0
    params["pos_alpha"] = jnp.ones((), jnp.float32)        # ScaledPositionalEncoding alpha
    params["enc_ln_g"] = jnp.ones((HIDDEN,), jnp.float32)
    params["enc_ln_b"] = jnp.zeros((HIDDEN,), jnp.float32)

    layers = []
    for _ in range(NUM_LAYERS):
        layers.append({
            "wq": nrm(next(keys), (HIDDEN, HIDDEN)),
            "wk": nrm(next(keys), (HIDDEN, HIDDEN)),
            "wv": nrm(next(keys), (HIDDEN, HIDDEN)),
            "bq": jnp.zeros((HIDDEN,), jnp.float32),
            "bk": jnp.zeros((HIDDEN,), jnp.float32),
            "bv": jnp.zeros((HIDDEN,), jnp.float32),
            "wo": nrm(next(keys), (HIDDEN, HIDDEN)),
            "bo": jnp.zeros((HIDDEN,), jnp.float32),
            "ln1_g": jnp.ones((HIDDEN,), jnp.float32),
            "ln1_b": jnp.zeros((HIDDEN,), jnp.float32),
            "w1": nrm(next(keys), (HIDDEN, FFN)),
            "b1": jnp.zeros((FFN,), jnp.float32),
            "w2": nrm(next(keys), (FFN, HIDDEN)),
            "b2": jnp.zeros((HIDDEN,), jnp.float32),
            "ln2_g": jnp.ones((HIDDEN,), jnp.float32),
            "ln2_b": jnp.zeros((HIDDEN,), jnp.float32),
        })
    params["layers"] = layers
    return params


def pack_params(params):
    """One-time packing: stack per-layer weights with a leading layer dim,
    pre-permute/zero-pad the QKV and output-projection weights so every
    per-head slice in the kernel is 128-lane aligned, and pre-cast all matmul
    weights to bf16 (biases / LN params stay f32)."""
    D, F, L = HIDDEN, FFN, NUM_LAYERS
    HP, hd, H = HEAD_PAD, HEAD_DIM, HEADS

    def pack_layer(lp):
        wqkv = jnp.zeros((D, W_QKV), jnp.float32)
        bqkv = jnp.zeros((W_QKV,), jnp.float32)
        wo_p = jnp.zeros((W_O, D), jnp.float32)
        for h in range(H):
            cs, ce = h * hd, (h + 1) * hd
            base = h * 3 * HP
            wqkv = wqkv.at[:, base:base + hd].set(lp["wq"][:, cs:ce])
            wqkv = wqkv.at[:, base + HP:base + HP + hd].set(lp["wk"][:, cs:ce])
            wqkv = wqkv.at[:, base + 2 * HP:base + 2 * HP + hd].set(lp["wv"][:, cs:ce])
            bqkv = bqkv.at[base:base + hd].set(lp["bq"][cs:ce])
            bqkv = bqkv.at[base + HP:base + HP + hd].set(lp["bk"][cs:ce])
            bqkv = bqkv.at[base + 2 * HP:base + 2 * HP + hd].set(lp["bv"][cs:ce])
            wo_p = wo_p.at[h * HP:h * HP + hd, :].set(lp["wo"][cs:ce, :])
        return wqkv, bqkv, wo_p

    wqkv_l, bqkv_l, wo_l = zip(*(pack_layer(lp) for lp in params["layers"]))
    stack = lambda name: jnp.stack([lp[name] for lp in params["layers"]])

    return {
        "embed": params["embed"],
        "pos_alpha": params["pos_alpha"],
        "enc_ln_g": params["enc_ln_g"].reshape(1, D),
        "enc_ln_b": params["enc_ln_b"].reshape(1, D),
        "wqkv": jnp.stack(wqkv_l).astype(jnp.bfloat16),
        "bqkv": jnp.stack(bqkv_l).reshape(L, 1, W_QKV),
        "wo": jnp.stack(wo_l).astype(jnp.bfloat16),
        "bo": stack("bo").reshape(L, 1, D),
        "ln1_g": stack("ln1_g").reshape(L, 1, D),
        "ln1_b": stack("ln1_b").reshape(L, 1, D),
        "w1": stack("w1").astype(jnp.bfloat16),
        "b1": stack("b1").reshape(L, 1, F),
        "w2": stack("w2").astype(jnp.bfloat16),
        "b2": stack("b2").reshape(L, 1, D),
        "ln2_g": stack("ln2_g").reshape(L, 1, D),
        "ln2_b": stack("ln2_b").reshape(L, 1, D),
    }


# --------------------------------- main ----------------------------------------
if __name__ == "__main__":
    key = jax.random.PRNGKey(0)
    kp, kx = jax.random.split(key)
    params = init_params(kp)
    packed = pack_params(params)          # one-time bf16 cast + head padding + stacking

    B, T = 2, 16
    lengths = jnp.array([16, 12], dtype=jnp.int32)                     # second seq padded
    attention_mask = (jnp.arange(T)[None, :] < lengths[:, None]).astype(jnp.int32)
    ids = jax.random.randint(kx, (B, T), 2, VOCAB, dtype=jnp.int32)
    input_ids = jnp.where(attention_mask > 0, ids, PAD_ID)

    fwd = jax.jit(textt5_pallas_forward)
    last_hidden, out_mask = fwd(packed, input_ids, attention_mask)
    jax.block_until_ready((last_hidden, out_mask))

    assert last_hidden.shape == (B, T, HIDDEN), last_hidden.shape
    assert out_mask.shape == (B, T), out_mask.shape
    assert bool(jnp.all(jnp.isfinite(last_hidden)))
    print("KERNEL_OK")
</pallas_src>

<mosaic_0001>
module attributes {stable_mosaic.version = 11 : i64} {
  func.func @_textt5_kernel(%arg0: i32, %arg1: i32, %arg2: memref<2x16x128xf32, #tpu.memory_space<vmem>>, %arg3: memref<1x32x32xf32, #tpu.memory_space<vmem>>, %arg4: memref<1x128xf32, #tpu.memory_space<vmem>>, %arg5: memref<1x128xf32, #tpu.memory_space<vmem>>, %arg6: memref<1x128x768xbf16, #tpu.memory_space<vmem>>, %arg7: memref<1x1x768xf32, #tpu.memory_space<vmem>>, %arg8: memref<1x256x128xbf16, #tpu.memory_space<vmem>>, %arg9: memref<1x1x128xf32, #tpu.memory_space<vmem>>, %arg10: memref<1x1x128xf32, #tpu.memory_space<vmem>>, %arg11: memref<1x1x128xf32, #tpu.memory_space<vmem>>, %arg12: memref<1x128x256xbf16, #tpu.memory_space<vmem>>, %arg13: memref<1x1x256xf32, #tpu.memory_space<vmem>>, %arg14: memref<1x256x128xbf16, #tpu.memory_space<vmem>>, %arg15: memref<1x1x128xf32, #tpu.memory_space<vmem>>, %arg16: memref<1x1x128xf32, #tpu.memory_space<vmem>>, %arg17: memref<1x1x128xf32, #tpu.memory_space<vmem>>, %arg18: memref<2x16x128xf32, #tpu.memory_space<vmem>>, %arg19: memref<32x128xf32, #tpu.memory_space<vmem>>) attributes {dimension_semantics = [#tpu.dimension_semantics<parallel>, #tpu.dimension_semantics<arbitrary>], iteration_bounds = array<i64: 1, 2>, scalar_prefetch = 0 : i64, scratch_operands = 1 : i64, tpu.core_type = #tpu.core_type<tc>, window_params = [{transform_indices = @transform_0, window_bounds = array<i64: 2, 16, 128>}, {transform_indices = @transform_1, window_bounds = array<i64: 1, 32, 32>}, {pipeline_mode = #tpu.pipeline_mode<synchronous>, transform_indices = @transform_2, window_bounds = array<i64: 1, 128>}, {pipeline_mode = #tpu.pipeline_mode<synchronous>, transform_indices = @transform_3, window_bounds = array<i64: 1, 128>}, {transform_indices = @transform_4, window_bounds = array<i64: 1, 128, 768>}, {transform_indices = @transform_5, window_bounds = array<i64: 1, 1, 768>}, {transform_indices = @transform_6, window_bounds = array<i64: 1, 256, 128>}, {transform_indices = @transform_7, window_bounds = array<i64: 1, 1, 128>}, {transform_indices = @transform_8, window_bounds = array<i64: 1, 1, 128>}, {transform_indices = @transform_9, window_bounds = array<i64: 1, 1, 128>}, {transform_indices = @transform_10, window_bounds = array<i64: 1, 128, 256>}, {transform_indices = @transform_11, window_bounds = array<i64: 1, 1, 256>}, {transform_indices = @transform_12, window_bounds = array<i64: 1, 256, 128>}, {transform_indices = @transform_13, window_bounds = array<i64: 1, 1, 128>}, {transform_indices = @transform_14, window_bounds = array<i64: 1, 1, 128>}, {transform_indices = @transform_15, window_bounds = array<i64: 1, 1, 128>}, {transform_indices = @transform_16, window_bounds = array<i64: 2, 16, 128>}]} {
    %c0_i32 = arith.constant 0 : i32
    %0 = arith.cmpi eq, %arg1, %c0_i32 : i32
    %1 = arith.extui %0 : i1 to i32
    %c0_i32_0 = arith.constant 0 : i32
    %2 = arith.cmpi ne, %1, %c0_i32_0 : i32
    scf.if %2 {
      %c0_71 = arith.constant 0 : index
      %c0_72 = arith.constant 0 : index
      %c0_73 = arith.constant 0 : index
      %154 = vector.load %arg2[%c0_71, %c0_72, %c0_73] : memref<2x16x128xf32, #tpu.memory_space<vmem>>, vector<2x16x128xf32>
      %155 = vector.shape_cast %154 : vector<2x16x128xf32> to vector<32x128xf32>
      %c0_74 = arith.constant 0 : index
      %c0_75 = arith.constant 0 : index
      %156 = vector.load %arg4[%c0_74, %c0_75] : memref<1x128xf32, #tpu.memory_space<vmem>>, vector<1x128xf32>
      %c0_76 = arith.constant 0 : index
      %c0_77 = arith.constant 0 : index
      %157 = vector.load %arg5[%c0_76, %c0_77] : memref<1x128xf32, #tpu.memory_space<vmem>>, vector<1x128xf32>
      %cst_78 = arith.constant dense<0.000000e+00> : vector<32xf32>
      %158 = vector.multi_reduction <add>, %155, %cst_78 [1] : vector<32x128xf32> to vector<32xf32>
      %159 = vector.shape_cast %158 : vector<32xf32> to vector<32x1xf32>
      %cst_79 = arith.constant 1.280000e+02 : f32
      %160 = vector.broadcast %cst_79 : f32 to vector<32x1xf32>
      %161 = arith.divf %159, %160 : vector<32x1xf32>
      %162 = vector.broadcast %161 : vector<32x1xf32> to vector<32x128xf32>
      %163 = arith.subf %155, %162 : vector<32x128xf32>
      %164 = arith.mulf %163, %163 : vector<32x128xf32>
      %cst_80 = arith.constant dense<0.000000e+00> : vector<32xf32>
      %165 = vector.multi_reduction <add>, %164, %cst_80 [1] : vector<32x128xf32> to vector<32xf32>
      %166 = vector.shape_cast %165 : vector<32xf32> to vector<32x1xf32>
      %cst_81 = arith.constant 1.280000e+02 : f32
      %167 = vector.broadcast %cst_81 : f32 to vector<32x1xf32>
      %168 = arith.divf %166, %167 : vector<32x1xf32>
      %169 = vector.broadcast %161 : vector<32x1xf32> to vector<32x128xf32>
      %170 = arith.subf %155, %169 : vector<32x128xf32>
      %cst_82 = arith.constant 9.99999974E-6 : f32
      %171 = vector.broadcast %cst_82 : f32 to vector<32x1xf32>
      %172 = arith.addf %168, %171 : vector<32x1xf32>
      %173 = math.rsqrt %172 : vector<32x1xf32>
      %174 = vector.broadcast %173 : vector<32x1xf32> to vector<32x128xf32>
      %175 = arith.mulf %170, %174 : vector<32x128xf32>
      %176 = vector.broadcast %156 : vector<1x128xf32> to vector<32x128xf32>
      %177 = arith.mulf %175, %176 : vector<32x128xf32>
      %178 = vector.broadcast %157 : vector<1x128xf32> to vector<32x128xf32>
      %179 = arith.addf %177, %178 : vector<32x128xf32>
      %c0_83 = arith.constant 0 : index
      %c0_84 = arith.constant 0 : index
      %180 = vector.load %arg19[%c0_83, %c0_84] : memref<32x128xf32, #tpu.memory_space<vmem>>, vector<32x128xf32>
      tpu.vector_store %arg19[%c0_83, %c0_84], %179 {strides = array<i32>} : memref<32x128xf32, #tpu.memory_space<vmem>>, vector<32x128xf32>,
    } else {
    }
    %c0 = arith.constant 0 : index
    %c0_1 = arith.constant 0 : index
    %3 = vector.load %arg19[%c0, %c0_1] : memref<32x128xf32, #tpu.memory_space<vmem>>, vector<32x128xf32>
    %c0_2 = arith.constant 0 : index
    %c0_3 = arith.constant 0 : index
    %c0_4 = arith.constant 0 : index
    %4 = vector.load %arg3[%c0_2, %c0_3, %c0_4] : memref<1x32x32xf32, #tpu.memory_space<vmem>>, vector<1x32x32xf32>
    %5 = vector.shape_cast %4 : vector<1x32x32xf32> to vector<32x32xf32>
    %c0_5 = arith.constant 0 : index
    %c0_6 = arith.constant 0 : index
    %c0_7 = arith.constant 0 : index
    %6 = vector.load %arg6[%c0_5, %c0_6, %c0_7] : memref<1x128x768xbf16, #tpu.memory_space<vmem>>, vector<1x128x768xbf16>
    %7 = vector.shape_cast %6 : vector<1x128x768xbf16> to vector<128x768xbf16>
    %8 = arith.truncf %3 : vector<32x128xf32> to vector<32x128xbf16>
    %cst = arith.constant dense<0.000000e+00> : vector<32x768xf32>
    %9 = tpu.matmul %8, %7, %cst {dimension_numbers = #tpu.dot_dimension_numbers<[1], [0], [0], [1], [0, 0, 1, 1], [], []>} : vector<32x128xbf16>, vector<128x768xbf16>, vector<32x768xf32> -> vector<32x768xf32>
    %c0_8 = arith.constant 0 : index
    %c0_9 = arith.constant 0 : index
    %c0_10 = arith.constant 0 : index
    %10 = vector.load %arg7[%c0_8, %c0_9, %c0_10] : memref<1x1x768xf32, #tpu.memory_space<vmem>>, vector<1x1x768xf32>
    %11 = vector.shape_cast %10 : vector<1x1x768xf32> to vector<1x768xf32>
    %12 = vector.broadcast %11 : vector<1x768xf32> to vector<32x768xf32>
    %13 = arith.addf %9, %12 : vector<32x768xf32>
    %14 = vector.extract_strided_slice %13 {offsets = [0, 0], sizes = [32, 128], strides = [1, 1]} : vector<32x768xf32> to vector<32x128xf32>
    %15 = arith.truncf %14 : vector<32x128xf32> to vector<32x128xbf16>
    %16 = vector.extract_strided_slice %13 {offsets = [0, 128], sizes = [32, 128], strides = [1, 1]} : vector<32x768xf32> to vector<32x128xf32>
    %17 = arith.truncf %16 : vector<32x128xf32> to vector<32x128xbf16>
    %18 = vector.extract_strided_slice %13 {offsets = [0, 256], sizes = [32, 128], strides = [1, 1]} : vector<32x768xf32> to vector<32x128xf32>
    %19 = arith.truncf %18 : vector<32x128xf32> to vector<32x128xbf16>
    %cst_11 = arith.constant dense<0.000000e+00> : vector<32x32xf32>
    %20 = tpu.matmul %15, %17, %cst_11 {dimension_numbers = #tpu.dot_dimension_numbers<[1], [1], [0], [0], [0, 0, 1, 0], [], []>} : vector<32x128xbf16>, vector<32x128xbf16>, vector<32x32xf32> -> vector<32x32xf32>
    %cst_12 = arith.constant 1.250000e-01 : f32
    %21 = vector.broadcast %cst_12 : f32 to vector<32x32xf32>
    %22 = arith.mulf %20, %21 : vector<32x32xf32>
    %23 = arith.addf %22, %5 : vector<32x32xf32>
    %cst_13 = arith.constant dense<0xFF800000> : vector<32xf32>
    %24 = vector.multi_reduction <maximumf>, %23, %cst_13 [1] : vector<32x32xf32> to vector<32xf32>
    %25 = vector.shape_cast %24 : vector<32xf32> to vector<32x1xf32>
    %26 = vector.broadcast %25 : vector<32x1xf32> to vector<32x32xf32>
    %27 = arith.subf %23, %26 : vector<32x32xf32>
    %28 = math.exp %27 : vector<32x32xf32>
    %cst_14 = arith.constant dense<0.000000e+00> : vector<32xf32>
    %29 = vector.multi_reduction <add>, %28, %cst_14 [1] : vector<32x32xf32> to vector<32xf32>
    %30 = vector.shape_cast %29 : vector<32xf32> to vector<32x1xf32>
    %31 = tpu.reciprocal %30 {approx = true} : vector<32x1xf32> -> vector<32x1xf32>
    %32 = vector.broadcast %31 : vector<32x1xf32> to vector<32x32xf32>
    %33 = arith.mulf %28, %32 : vector<32x32xf32>
    %34 = arith.truncf %33 : vector<32x32xf32> to vector<32x32xbf16>
    %cst_15 = arith.constant dense<0.000000e+00> : vector<32x128xf32>
    %35 = tpu.matmul %34, %19, %cst_15 {dimension_numbers = #tpu.dot_dimension_numbers<[1], [0], [0], [1], [0, 0, 1, 1], [], []>} : vector<32x32xbf16>, vector<32x128xbf16>, vector<32x128xf32> -> vector<32x128xf32>
    %36 = vector.extract_strided_slice %13 {offsets = [0, 384], sizes = [32, 128], strides = [1, 1]} : vector<32x768xf32> to vector<32x128xf32>
    %37 = arith.truncf %36 : vector<32x128xf32> to vector<32x128xbf16>
    %38 = vector.extract_strided_slice %13 {offsets = [0, 512], sizes = [32, 128], strides = [1, 1]} : vector<32x768xf32> to vector<32x128xf32>
    %39 = arith.truncf %38 : vector<32x128xf32> to vector<32x128xbf16>
    %40 = vector.extract_strided_slice %13 {offsets = [0, 640], sizes = [32, 128], strides = [1, 1]} : vector<32x768xf32> to vector<32x128xf32>
    %41 = arith.truncf %40 : vector<32x128xf32> to vector<32x128xbf16>
    %cst_16 = arith.constant dense<0.000000e+00> : vector<32x32xf32>
    %42 = tpu.matmul %37, %39, %cst_16 {dimension_numbers = #tpu.dot_dimension_numbers<[1], [1], [0], [0], [0, 0, 1, 0], [], []>} : vector<32x128xbf16>, vector<32x128xbf16>, vector<32x32xf32> -> vector<32x32xf32>
    %cst_17 = arith.constant 1.250000e-01 : f32
    %43 = vector.broadcast %cst_17 : f32 to vector<32x32xf32>
    %44 = arith.mulf %42, %43 : vector<32x32xf32>
    %45 = arith.addf %44, %5 : vector<32x32xf32>
    %cst_18 = arith.constant dense<0xFF800000> : vector<32xf32>
    %46 = vector.multi_reduction <maximumf>, %45, %cst_18 [1] : vector<32x32xf32> to vector<32xf32>
    %47 = vector.shape_cast %46 : vector<32xf32> to vector<32x1xf32>
    %48 = vector.broadcast %47 : vector<32x1xf32> to vector<32x32xf32>
    %49 = arith.subf %45, %48 : vector<32x32xf32>
    %50 = math.exp %49 : vector<32x32xf32>
    %cst_19 = arith.constant dense<0.000000e+00> : vector<32xf32>
    %51 = vector.multi_reduction <add>, %50, %cst_19 [1] : vector<32x32xf32> to vector<32xf32>
    %52 = vector.shape_cast %51 : vector<32xf32> to vector<32x1xf32>
    %53 = tpu.reciprocal %52 {approx = true} : vector<32x1xf32> -> vector<32x1xf32>
    %54 = vector.broadcast %53 : vector<32x1xf32> to vector<32x32xf32>
    %55 = arith.mulf %50, %54 : vector<32x32xf32>
    %56 = arith.truncf %55 : vector<32x32xf32> to vector<32x32xbf16>
    %cst_20 = arith.constant dense<0.000000e+00> : vector<32x128xf32>
    %57 = tpu.matmul %56, %41, %cst_20 {dimension_numbers = #tpu.dot_dimension_numbers<[1], [0], [0], [1], [0, 0, 1, 1], [], []>} : vector<32x32xbf16>, vector<32x128xbf16>, vector<32x128xf32> -> vector<32x128xf32>
    %58 = tpu.concatenate %35, %57 in 1 : vector<32x128xf32>, vector<32x128xf32> -> vector<32x256xf32>
    %c0_21 = arith.constant 0 : index
    %c0_22 = arith.constant 0 : index
    %c0_23 = arith.constant 0 : index
    %59 = vector.load %arg8[%c0_21, %c0_22, %c0_23] : memref<1x256x128xbf16, #tpu.memory_space<vmem>>, vector<1x256x128xbf16>
    %60 = vector.shape_cast %59 : vector<1x256x128xbf16> to vector<256x128xbf16>
    %61 = arith.truncf %58 : vector<32x256xf32> to vector<32x256xbf16>
    %cst_24 = arith.constant dense<0.000000e+00> : vector<32x128xf32>
    %62 = tpu.matmul %61, %60, %cst_24 {dimension_numbers = #tpu.dot_dimension_numbers<[1], [0], [0], [1], [0, 0, 1, 1], [], []>} : vector<32x256xbf16>, vector<256x128xbf16>, vector<32x128xf32> -> vector<32x128xf32>
    %c0_25 = arith.constant 0 : index
    %c0_26 = arith.constant 0 : index
    %c0_27 = arith.constant 0 : index
    %63 = vector.load %arg9[%c0_25, %c0_26, %c0_27] : memref<1x1x128xf32, #tpu.memory_space<vmem>>, vector<1x1x128xf32>
    %64 = vector.shape_cast %63 : vector<1x1x128xf32> to vector<1x128xf32>
    %65 = vector.broadcast %64 : vector<1x128xf32> to vector<32x128xf32>
    %66 = arith.addf %62, %65 : vector<32x128xf32>
    %67 = arith.addf %3, %66 : vector<32x128xf32>
    %c0_28 = arith.constant 0 : index
    %c0_29 = arith.constant 0 : index
    %c0_30 = arith.constant 0 : index
    %68 = vector.load %arg10[%c0_28, %c0_29, %c0_30] : memref<1x1x128xf32, #tpu.memory_space<vmem>>, vector<1x1x128xf32>
    %69 = vector.shape_cast %68 : vector<1x1x128xf32> to vector<1x128xf32>
    %c0_31 = arith.constant 0 : index
    %c0_32 = arith.constant 0 : index
    %c0_33 = arith.constant 0 : index
    %70 = vector.load %arg11[%c0_31, %c0_32, %c0_33] : memref<1x1x128xf32, #tpu.memory_space<vmem>>, vector<1x1x128xf32>
    %71 = vector.shape_cast %70 : vector<1x1x128xf32> to vector<1x128xf32>
    %cst_34 = arith.constant dense<0.000000e+00> : vector<32xf32>
    %72 = vector.multi_reduction <add>, %67, %cst_34 [1] : vector<32x128xf32> to vector<32xf32>
    %73 = vector.shape_cast %72 : vector<32xf32> to vector<32x1xf32>
    %cst_35 = arith.constant 1.280000e+02 : f32
    %74 = vector.broadcast %cst_35 : f32 to vector<32x1xf32>
    %75 = arith.divf %73, %74 : vector<32x1xf32>
    %76 = vector.broadcast %75 : vector<32x1xf32> to vector<32x128xf32>
    %77 = arith.subf %67, %76 : vector<32x128xf32>
    %78 = arith.mulf %77, %77 : vector<32x128xf32>
    %cst_36 = arith.constant dense<0.000000e+00> : vector<32xf32>
    %79 = vector.multi_reduction <add>, %78, %cst_36 [1] : vector<32x128xf32> to vector<32xf32>
    %80 = vector.shape_cast %79 : vector<32xf32> to vector<32x1xf32>
    %cst_37 = arith.constant 1.280000e+02 : f32
    %81 = vector.broadcast %cst_37 : f32 to vector<32x1xf32>
    %82 = arith.divf %80, %81 : vector<32x1xf32>
    %83 = vector.broadcast %75 : vector<32x1xf32> to vector<32x128xf32>
    %84 = arith.subf %67, %83 : vector<32x128xf32>
    %cst_38 = arith.constant 9.99999974E-6 : f32
    %85 = vector.broadcast %cst_38 : f32 to vector<32x1xf32>
    %86 = arith.addf %82, %85 : vector<32x1xf32>
    %87 = math.rsqrt %86 : vector<32x1xf32>
    %88 = vector.broadcast %87 : vector<32x1xf32> to vector<32x128xf32>
    %89 = arith.mulf %84, %88 : vector<32x128xf32>
    %90 = vector.broadcast %69 : vector<1x128xf32> to vector<32x128xf32>
    %91 = arith.mulf %89, %90 : vector<32x128xf32>
    %92 = vector.broadcast %71 : vector<1x128xf32> to vector<32x128xf32>
    %93 = arith.addf %91, %92 : vector<32x128xf32>
    %c0_39 = arith.constant 0 : index
    %c0_40 = arith.constant 0 : index
    %c0_41 = arith.constant 0 : index
    %94 = vector.load %arg12[%c0_39, %c0_40, %c0_41] : memref<1x128x256xbf16, #tpu.memory_space<vmem>>, vector<1x128x256xbf16>
    %95 = vector.shape_cast %94 : vector<1x128x256xbf16> to vector<128x256xbf16>
    %96 = arith.truncf %93 : vector<32x128xf32> to vector<32x128xbf16>
    %cst_42 = arith.constant dense<0.000000e+00> : vector<32x256xf32>
    %97 = tpu.matmul %96, %95, %cst_42 {dimension_numbers = #tpu.dot_dimension_numbers<[1], [0], [0], [1], [0, 0, 1, 1], [], []>} : vector<32x128xbf16>, vector<128x256xbf16>, vector<32x256xf32> -> vector<32x256xf32>
    %c0_43 = arith.constant 0 : index
    %c0_44 = arith.constant 0 : index
    %c0_45 = arith.constant 0 : index
    %98 = vector.load %arg13[%c0_43, %c0_44, %c0_45] : memref<1x1x256xf32, #tpu.memory_space<vmem>>, vector<1x1x256xf32>
    %99 = vector.shape_cast %98 : vector<1x1x256xf32> to vector<1x256xf32>
    %100 = vector.broadcast %99 : vector<1x256xf32> to vector<32x256xf32>
    %101 = arith.addf %97, %100 : vector<32x256xf32>
    %cst_46 = arith.constant 5.000000e-01 : f32
    %102 = vector.broadcast %cst_46 : f32 to vector<32x256xf32>
    %103 = arith.mulf %102, %101 : vector<32x256xf32>
    %cst_47 = arith.constant 4.471500e-02 : f32
    %104 = vector.broadcast %cst_47 : f32 to vector<32x256xf32>
    %105 = arith.mulf %104, %101 : vector<32x256xf32>
    %106 = arith.mulf %105, %101 : vector<32x256xf32>
    %107 = arith.mulf %106, %101 : vector<32x256xf32>
    %108 = arith.addf %101, %107 : vector<32x256xf32>
    %cst_48 = arith.constant 0.797884583 : f32
    %109 = vector.broadcast %cst_48 : f32 to vector<32x256xf32>
    %110 = arith.mulf %109, %108 : vector<32x256xf32>
    %111 = math.tanh %110 : vector<32x256xf32>
    %cst_49 = arith.constant 1.000000e+00 : f32
    %112 = vector.broadcast %cst_49 : f32 to vector<32x256xf32>
    %113 = arith.addf %112, %111 : vector<32x256xf32>
    %114 = arith.mulf %103, %113 : vector<32x256xf32>
    %c0_50 = arith.constant 0 : index
    %c0_51 = arith.constant 0 : index
    %c0_52 = arith.constant 0 : index
    %115 = vector.load %arg14[%c0_50, %c0_51, %c0_52] : memref<1x256x128xbf16, #tpu.memory_space<vmem>>, vector<1x256x128xbf16>
    %116 = vector.shape_cast %115 : vector<1x256x128xbf16> to vector<256x128xbf16>
    %117 = arith.truncf %114 : vector<32x256xf32> to vector<32x256xbf16>
    %cst_53 = arith.constant dense<0.000000e+00> : vector<32x128xf32>
    %118 = tpu.matmul %117, %116, %cst_53 {dimension_numbers = #tpu.dot_dimension_numbers<[1], [0], [0], [1], [0, 0, 1, 1], [], []>} : vector<32x256xbf16>, vector<256x128xbf16>, vector<32x128xf32> -> vector<32x128xf32>
    %c0_54 = arith.constant 0 : index
    %c0_55 = arith.constant 0 : index
    %c0_56 = arith.constant 0 : index
    %119 = vector.load %arg15[%c0_54, %c0_55, %c0_56] : memref<1x1x128xf32, #tpu.memory_space<vmem>>, vector<1x1x128xf32>
    %120 = vector.shape_cast %119 : vector<1x1x128xf32> to vector<1x128xf32>
    %121 = vector.broadcast %120 : vector<1x128xf32> to vector<32x128xf32>
    %122 = arith.addf %118, %121 : vector<32x128xf32>
    %123 = arith.addf %93, %122 : vector<32x128xf32>
    %c0_57 = arith.constant 0 : index
    %c0_58 = arith.constant 0 : index
    %c0_59 = arith.constant 0 : index
    %124 = vector.load %arg16[%c0_57, %c0_58, %c0_59] : memref<1x1x128xf32, #tpu.memory_space<vmem>>, vector<1x1x128xf32>
    %125 = vector.shape_cast %124 : vector<1x1x128xf32> to vector<1x128xf32>
    %c0_60 = arith.constant 0 : index
    %c0_61 = arith.constant 0 : index
    %c0_62 = arith.constant 0 : index
    %126 = vector.load %arg17[%c0_60, %c0_61, %c0_62] : memref<1x1x128xf32, #tpu.memory_space<vmem>>, vector<1x1x128xf32>
    %127 = vector.shape_cast %126 : vector<1x1x128xf32> to vector<1x128xf32>
    %cst_63 = arith.constant dense<0.000000e+00> : vector<32xf32>
    %128 = vector.multi_reduction <add>, %123, %cst_63 [1] : vector<32x128xf32> to vector<32xf32>
    %129 = vector.shape_cast %128 : vector<32xf32> to vector<32x1xf32>
    %cst_64 = arith.constant 1.280000e+02 : f32
    %130 = vector.broadcast %cst_64 : f32 to vector<32x1xf32>
    %131 = arith.divf %129, %130 : vector<32x1xf32>
    %132 = vector.broadcast %131 : vector<32x1xf32> to vector<32x128xf32>
    %133 = arith.subf %123, %132 : vector<32x128xf32>
    %134 = arith.mulf %133, %133 : vector<32x128xf32>
    %cst_65 = arith.constant dense<0.000000e+00> : vector<32xf32>
    %135 = vector.multi_reduction <add>, %134, %cst_65 [1] : vector<32x128xf32> to vector<32xf32>
    %136 = vector.shape_cast %135 : vector<32xf32> to vector<32x1xf32>
    %cst_66 = arith.constant 1.280000e+02 : f32
    %137 = vector.broadcast %cst_66 : f32 to vector<32x1xf32>
    %138 = arith.divf %136, %137 : vector<32x1xf32>
    %139 = vector.broadcast %131 : vector<32x1xf32> to vector<32x128xf32>
    %140 = arith.subf %123, %139 : vector<32x128xf32>
    %cst_67 = arith.constant 9.99999974E-6 : f32
    %141 = vector.broadcast %cst_67 : f32 to vector<32x1xf32>
    %142 = arith.addf %138, %141 : vector<32x1xf32>
    %143 = math.rsqrt %142 : vector<32x1xf32>
    %144 = vector.broadcast %143 : vector<32x1xf32> to vector<32x128xf32>
    %145 = arith.mulf %140, %144 : vector<32x128xf32>
    %146 = vector.broadcast %125 : vector<1x128xf32> to vector<32x128xf32>
    %147 = arith.mulf %145, %146 : vector<32x128xf32>
    %148 = vector.broadcast %127 : vector<1x128xf32> to vector<32x128xf32>
    %149 = arith.addf %147, %148 : vector<32x128xf32>
    %c0_68 = arith.constant 0 : index
    %c0_69 = arith.constant 0 : index
    %150 = vector.load %arg19[%c0_68, %c0_69] : memref<32x128xf32, #tpu.memory_space<vmem>>, vector<32x128xf32>
    tpu.vector_store %arg19[%c0_68, %c0_69], %149 {strides = array<i32>} : memref<32x128xf32, #tpu.memory_space<vmem>>, vector<32x128xf32>,
    %c1_i32 = arith.constant 1 : i32
    %151 = arith.cmpi eq, %arg1, %c1_i32 : i32
    %152 = arith.extui %151 : i1 to i32
    %c0_i32_70 = arith.constant 0 : i32
    %153 = arith.cmpi ne, %152, %c0_i32_70 : i32
    scf.if %153 {
      %154 = vector.shape_cast %149 : vector<32x128xf32> to vector<2x16x128xf32>
      %c0_71 = arith.constant 0 : index
      %c0_72 = arith.constant 0 : index
      %c0_73 = arith.constant 0 : index
      %155 = vector.load %arg18[%c0_71, %c0_72, %c0_73] : memref<2x16x128xf32, #tpu.memory_space<vmem>>, vector<2x16x128xf32>
      tpu.vector_store %arg18[%c0_71, %c0_72, %c0_73], %154 {strides = array<i32>} : memref<2x16x128xf32, #tpu.memory_space<vmem>>, vector<2x16x128xf32>,
    } else {
    }
    return
  }
  func.func @transform_0(%arg0: i32, %arg1: i32) -> (i32, i32, i32) {
    %c0_i32 = arith.constant 0 : i32
    %c0_i32_0 = arith.constant 0 : i32
    %c0_i32_1 = arith.constant 0 : i32
    return %arg0, %c0_i32, %c0_i32_0 : i32, i32, i32
  }
  func.func @transform_1(%arg0: i32, %arg1: i32) -> (i32, i32, i32) {
    %c0_i32 = arith.constant 0 : i32
    %c0_i32_0 = arith.constant 0 : i32
    %c0_i32_1 = arith.constant 0 : i32
    return %arg0, %c0_i32, %c0_i32_0 : i32, i32, i32
  }
  func.func @transform_2(%arg0: i32, %arg1: i32) -> (i32, i32) {
    %c0_i32 = arith.constant 0 : i32
    %c0_i32_0 = arith.constant 0 : i32
    %c0_i32_1 = arith.constant 0 : i32
    return %c0_i32, %c0_i32_0 : i32, i32
  }
  func.func @transform_3(%arg0: i32, %arg1: i32) -> (i32, i32) {
    %c0_i32 = arith.constant 0 : i32
    %c0_i32_0 = arith.constant 0 : i32
    %c0_i32_1 = arith.constant 0 : i32
    return %c0_i32, %c0_i32_0 : i32, i32
  }
  func.func @transform_4(%arg0: i32, %arg1: i32) -> (i32, i32, i32) {
    %c0_i32 = arith.constant 0 : i32
    %c0_i32_0 = arith.constant 0 : i32
    %c0_i32_1 = arith.constant 0 : i32
    return %arg1, %c0_i32, %c0_i32_0 : i32, i32, i32
  }
  func.func @transform_5(%arg0: i32, %arg1: i32) -> (i32, i32, i32) {
    %c0_i32 = arith.constant 0 : i32
    %c0_i32_0 = arith.constant 0 : i32
    %c0_i32_1 = arith.constant 0 : i32
    return %arg1, %c0_i32, %c0_i32_0 : i32, i32, i32
  }
  func.func @transform_6(%arg0: i32, %arg1: i32) -> (i32, i32, i32) {
    %c0_i32 = arith.constant 0 : i32
    %c0_i32_0 = arith.constant 0 : i32
    %c0_i32_1 = arith.constant 0 : i32
    return %arg1, %c0_i32, %c0_i32_0 : i32, i32, i32
  }
  func.func @transform_7(%arg0: i32, %arg1: i32) -> (i32, i32, i32) {
    %c0_i32 = arith.constant 0 : i32
    %c0_i32_0 = arith.constant 0 : i32
    %c0_i32_1 = arith.constant 0 : i32
    return %arg1, %c0_i32, %c0_i32_0 : i32, i32, i32
  }
  func.func @transform_8(%arg0: i32, %arg1: i32) -> (i32, i32, i32) {
    %c0_i32 = arith.constant 0 : i32
    %c0_i32_0 = arith.constant 0 : i32
    %c0_i32_1 = arith.constant 0 : i32
    return %arg1, %c0_i32, %c0_i32_0 : i32, i32, i32
  }
  func.func @transform_9(%arg0: i32, %arg1: i32) -> (i32, i32, i32) {
    %c0_i32 = arith.constant 0 : i32
    %c0_i32_0 = arith.constant 0 : i32
    %c0_i32_1 = arith.constant 0 : i32
    return %arg1, %c0_i32, %c0_i32_0 : i32, i32, i32
  }
  func.func @transform_10(%arg0: i32, %arg1: i32) -> (i32, i32, i32) {
    %c0_i32 = arith.constant 0 : i32
    %c0_i32_0 = arith.constant 0 : i32
    %c0_i32_1 = arith.constant 0 : i32
    return %arg1, %c0_i32, %c0_i32_0 : i32, i32, i32
  }
  func.func @transform_11(%arg0: i32, %arg1: i32) -> (i32, i32, i32) {
    %c0_i32 = arith.constant 0 : i32
    %c0_i32_0 = arith.constant 0 : i32
    %c0_i32_1 = arith.constant 0 : i32
    return %arg1, %c0_i32, %c0_i32_0 : i32, i32, i32
  }
  func.func @transform_12(%arg0: i32, %arg1: i32) -> (i32, i32, i32) {
    %c0_i32 = arith.constant 0 : i32
    %c0_i32_0 = arith.constant 0 : i32
    %c0_i32_1 = arith.constant 0 : i32
    return %arg1, %c0_i32, %c0_i32_0 : i32, i32, i32
  }
  func.func @transform_13(%arg0: i32, %arg1: i32) -> (i32, i32, i32) {
    %c0_i32 = arith.constant 0 : i32
    %c0_i32_0 = arith.constant 0 : i32
    %c0_i32_1 = arith.constant 0 : i32
    return %arg1, %c0_i32, %c0_i32_0 : i32, i32, i32
  }
  func.func @transform_14(%arg0: i32, %arg1: i32) -> (i32, i32, i32) {
    %c0_i32 = arith.constant 0 : i32
    %c0_i32_0 = arith.constant 0 : i32
    %c0_i32_1 = arith.constant 0 : i32
    return %arg1, %c0_i32, %c0_i32_0 : i32, i32, i32
  }
  func.func @transform_15(%arg0: i32, %arg1: i32) -> (i32, i32, i32) {
    %c0_i32 = arith.constant 0 : i32
    %c0_i32_0 = arith.constant 0 : i32
    %c0_i32_1 = arith.constant 0 : i32
    return %arg1, %c0_i32, %c0_i32_0 : i32, i32, i32
  }
  func.func @transform_16(%arg0: i32, %arg1: i32) -> (i32, i32, i32) {
    %c0_i32 = arith.constant 0 : i32
    %c0_i32_0 = arith.constant 0 : i32
    %c0_i32_1 = arith.constant 0 : i32
    return %arg0, %c0_i32, %c0_i32_0 : i32, i32, i32
  }
}

</mosaic_0001>

<bundles_post_ra>
// kernel: textt5_pallas_forward.1
= control target key start
LH: loop header
LB: loop body
LE: loop exit
PB: predicated region body
PF: predicated region fallthrough
CT: control target
= control target key end

     0   :  { %s4415_s0 = inlined_call_operand.vmem [shape: f32[2,16,128], index: 0, kind: input, shape index: {}]   ;;  %s4416_s1 = inlined_call_operand.vmem [shape: f32[1,32,32], index: 1, kind: input, shape index: {}]   ;;  %s4417_s2 = inlined_call_operand.hbm [shape: f32[1,128], index: 2, kind: input, shape index: {}]   ;;  %s4418_s3 = inlined_call_operand.hbm [shape: f32[1,128], index: 3, kind: input, shape index: {}]   ;;  %s4419_s4 = inlined_call_operand.vmem [shape: bf16[2,128,768], index: 4, kind: input, shape index: {}]   ;;  %s4420_s5 = inlined_call_operand.vmem [shape: f32[2,1,768], index: 5, kind: input, shape index: {}]   ;;  %s4421_s6 = inlined_call_operand.vmem [shape: bf16[2,256,128], index: 6, kind: input, shape index: {}]   ;;  %s4422_s7 = inlined_call_operand.vmem [shape: f32[2,1,128], index: 7, kind: input, shape index: {}]   ;;  %s4423_s8 = inlined_call_operand.hbm [shape: f32[2,1,128], index: 8, kind: input, shape index: {}]   ;;  %s4424_s9 = inlined_call_operand.vmem [shape: f32[2,1,128], index: 9, kind: input, shape index: {}]   ;;  %s4425_s10 = inlined_call_operand.hbm [shape: bf16[2,128,256], index: 10, kind: input, shape index: {}]   ;;  %s4426_s11 = inlined_call_operand.vmem [shape: f32[2,1,256], index: 11, kind: input, shape index: {}]   ;;  %s4427_s12 = inlined_call_operand.hbm [shape: bf16[2,256,128], index: 12, kind: input, shape index: {}]   ;;  %s4428_s13 = inlined_call_operand.vmem [shape: f32[2,1,128], index: 13, kind: input, shape index: {}]   ;;  %s4429_s14 = inlined_call_operand.hbm [shape: f32[2,1,128], index: 14, kind: input, shape index: {}]   ;;  %s4430_s15 = inlined_call_operand.hbm [shape: f32[2,1,128], index: 15, kind: input, shape index: {}]   ;;  %s4431_s16 = inlined_call_operand.hbm [shape: f32[2,16,128], index: 16, kind: output, shape index: {}]  }
   0x1   :  { %4448 = sst [smem:[#allocation22_spill]] %s4415_s0 }
   0x2   :  { %4449 = sst [smem:[#allocation23_spill]] %s4416_s1 }
   0x3   :  { %4450 = sst [smem:[#allocation24_spill]] %s4417_s2 }
   0x4   :  { %4451 = sst [smem:[#allocation25_spill]] %s4418_s3 }
   0x5   :  { %4452 = sst [smem:[#allocation26_spill]] %s4419_s4 }
   0x6   :  { %4453 = sst [smem:[#allocation27_spill]] %s4420_s5 }
   0x7   :  { %4454 = sst [smem:[#allocation28_spill]] %s4421_s6 }
   0x8   :  { %4455 = sst [smem:[#allocation29_spill]] %s4422_s7 }
   0x9   :  { %4456 = sst [smem:[#allocation30_spill]] %s4423_s8 }
   0xa   :  { %4457 = sst [smem:[#allocation31_spill]] %s4424_s9 }
   0xb   :  { %4458 = sst [smem:[#allocation32_spill]] %s4425_s10 }
   0xc   :  { %4459 = sst [smem:[#allocation33_spill]] %s4426_s11 }
   0xd   :  { %4460 = sst [smem:[#allocation34_spill]] %s4427_s12 }
   0xe   :  { %4461 = sst [smem:[#allocation35_spill]] %s4428_s13 }
   0xf   :  { %4462 = sst [smem:[#allocation36_spill]] %s4429_s14 }
  0x10   :  { %4463 = sst [smem:[#allocation37_spill]] %s4430_s15 }
  0x11   :  { %4464 = sst [smem:[#allocation38_spill]] %s4431_s16 }
  0x12   :  { %21 = vsyncpa [#allocation4], 0 }
  0x13   :  { %22 = vsyncpa [#allocation7], 0 }
  0x14   :  { %23 = vsyncpa [#allocation5], 0  ;;  %s3745_s21 = smov 0   ;;  %s3747_s22 = smov 0  }
  0x15   :  { %s3749_s23 = smov 0   ;;  %s3751_s24 = smov 0  }
  0x16   :  { %s3753_s25 = smov 0   ;;  %s3755_s26 = smov 0  }
  0x17 LB: > { %4465 = sst [smem:[#allocation18_spill]] %s3639_s25  ;;  %s3774_s27 = sadd.s32 4294967295, %s3643_s26   ;;  %s3643_s26 = sphi %s3755_s26, %s29_s26   ;;  %s3639_s25 = sphi %s3753_s25, %s4517_s25   ;;  %s3635_s24 = sphi %s3751_s24, %s4516_s24   ;;  %s3631_s23 = sphi %s3749_s23, %s4520_s23   ;;  %s3627_s22 = sphi %s3747_s22, %s4519_s22   ;;  %s3623_s21 = sphi %s3745_s21, %s4518_s21  }
  0x18   : > { %4466 = sst [smem:[#allocation19_spill]] %s3643_s26  ;;  %p253_p0 = scmp.ne.s32.totalorder %s3631_s23, %s3627_s22 }
  0x19   : > { %p254_p1 = scmp.eq.s32.totalorder %s3643_s26, 0  ;;  %p259_p2 = scmp.ne.s32.totalorder %s3627_s22, %s3623_s21 }
  0x1a   : > { %p4435_p3 = scmp.eq.s32.totalorder %s3774_s27, 0  ;;  %p2792_p5 = scmp.ge.s32.totalorder %s3643_s26, 1 }
  0x1b   : > { %p255_p4 = por %p254_p1, %p253_p0  ;;  %p478_p7 = scmp.lt.s32.totalorder %s3643_s26, 3 }
  0x1c   : > { %p3785_p6 = por %p4435_p3, %p259_p2  ;;  %s3645_s0 = smov [#allocation3]  }
  0x1d   : > { %p3790_p8 = pnand %p2792_p5, %p478_p7  ;;  %s509_s17 = sshll.u32 %s3645_s0, 4  ;;  %s510_s17 = int_to_ptr.vmem [resolvable:$true] %s509_s17 }
  0x1e   : > { %s4467_s29 = scalar_select %p3785_p6, 1, 0 }
  0x1f   : > { %s4468_s30 = scalar_select %p3790_p8, 1, 0 }
  0x20   : > { %p3061_p9 = pneg %p3790_p8  ;;  %p3086_p10 = scmp.lt.s32.totalorder %s3643_s26, 2 }
  0x21   : > { %s4471_s2 = sld [smem:[#allocation24_spill]] }
  0x22   : > { %p3800_p11 = pnand %p3061_p9, %p4435_p3  ;;  %p3804_p12 = pnand %p3086_p10, %p255_p4 }
  0x24   : > { %s4469_s19 = scalar_select %p3800_p11, 1, 0 }
  0x25   : > { %s4470_s20 = scalar_select %p3804_p12, 1, 0 }
  0x26   : > { %p4440_p0 = pneg %p3800_p11 }
  0x27   : > { %s3349_s0 = scalar_lea.hbm %s4471_s2, 16 }
  0x28   : > { %p3350_p13 = scmp.ne.s32.totalorder %s4471_s2, %s3349_s0  ;;  %p3356_p4 = scmp.lt.u32.totalorder %s3349_s0, %s4471_s2 }
  0x2a   : > { %p3352_p1 = pnand %p4440_p0, %p3350_p13 }
  0x2c   : > { %p3353_p2 = pneg %p3352_p1 }
  0x2e   : > { %p3358_p5 = pnand %p3356_p4, %p3353_p2 }
  0x30   : > { %3361 = shalt.err (!%p3358_p5)
}
  0x31   : > { %s3362_s13 = scalar_lea.vmem %s510_s17, 16  ;;  %s3369_s1 = scalar_lea.vmem %s510_s17, 32 }
  0x32   : > { %p3363_p7 = scmp.ne.s32.totalorder %s510_s17, %s3362_s13  ;;  %p3370_p3 = scmp.lt.s32.totalorder %s510_s17, %s510_s17 }
  0x33   : > { %p3371_p6 = scmp.lt.s32.totalorder %s3369_s1, %s3362_s13 }
  0x34   : > { %p3365_p9 = pnand %p3363_p7, %p4440_p0 }
  0x35   : > { %p3372_p8 = por %p3371_p6, %p3370_p3 }
  0x36   : > { %p3366_p10 = pneg %p3365_p9 }
  0x38   : > { %p3373_p12 = pnand %p3372_p8, %p3366_p10 }
  0x3a   : > { %3376 = shalt.err (!%p3373_p12)
}
  0x3b   : > { %3064 = dma.hbm_to_vmem [thread:$0]  (!%p3800_p11), %s4471_s2, 16, %s510_s17, [#allocation4]  }
  0x3c   : > { %s38_s28 = sadd.s32 1, %s3639_s25  ;;  %s3832_s18 = sand.u32 1, %s3631_s23  }
  0x3d   : > { %p39_p3 = scmp.ge.s32.totalorder %s38_s28, 2  ;;  %s3835_s13 = sshll.u32 %s3639_s25, 4 }
  0x3e   : > { %s563_s21 = scalar_lea.vmem [#allocation8], %s3832_s18  ;;  %s4473_s8 = sld [smem:[#allocation30_spill]] }
  0x3f   : > { %s570_s0 = sshll.u32 %s563_s21, 4  ;;  %s4522_s28 = smov (%p39_p3, %s38_s28), 0  ;;  %s3846_s0 = int_to_ptr.vmem [resolvable:$true] %s570_s0 }
  0x40   : > { %4472 = sst [smem:[#allocation20_spill]] %s4522_s28  ;;  %s243_s17 = ssub.s32 %s3639_s25, %s4522_s28 }
  0x41   : > { %p3851_p6 = scmp.eq.s32.totalorder %s243_s17, 0  ;;  %s4475_s21 = sand.u32 1, %s3643_s26  }
  0x42   : > { %s3857_s5 = scalar_lea.sflag [#allocation4], %s4475_s21  ;;  %p4476_p12 = scmp.ne.s32.totalorder %s4470_s20, 0 }
  0x43   : > { %s4474_s9 = scalar_select %p3851_p6, 1, 0 }
  0x44   : > { %s3844_s11 = scalar_lea.hbm %s4473_s8, %s3835_s13  ;;  %p3863_p13 = pneg %p4476_p12 }
  0x45   : > { %s3377_s7 = scalar_lea.hbm %s3844_s11, 16  ;;  %s3382_s17 = scalar_lea.hbm %s4473_s8, 32 }
  0x46   : > { %p3378_p8 = scmp.ne.s32.totalorder %s3844_s11, %s3377_s7  ;;  %p3383_p4 = scmp.lt.u32.totalorder %s3844_s11, %s4473_s8 }
  0x47   : > { %s4477_s1 = scalar_select %p3863_p13, 1, 0 }
  0x48   : > { %p3380_p1 = pnand %p3863_p13, %p3378_p8  ;;  %p3384_p5 = scmp.lt.u32.totalorder %s3382_s17, %s3377_s7 }
  0x49   : > { %p3386_p9 = scmp.lt.u32.totalorder %s3377_s7, %s3844_s11 }
  0x4a   : > { %p3381_p2 = pneg %p3380_p1  ;;  %p3385_p7 = por %p3384_p5, %p3383_p4 }
  0x4c   : > { %p3387_p10 = por %p3386_p9, %p3385_p7 }
  0x4e   : > { %p3388_p3 = pnand %p3387_p10, %p3381_p2 }
  0x50   : > { %3391 = shalt.err (!%p3388_p3)
}
  0x51   : > { %s3392_s21 = scalar_lea.vmem %s3846_s0, 16  ;;  %s3646_s2 = smov [#allocation8]  }
  0x52   : > { %p3393_p8 = scmp.ne.s32.totalorder %s3846_s0, %s3392_s21  ;;  %s3397_s16 = sshll.u32 %s3646_s2, 4  ;;  %s3398_s16 = int_to_ptr.vmem [resolvable:$false] %s3397_s16 }
  0x53   : > { %s3399_s4 = scalar_lea.vmem %s3398_s16, 32  ;;  %p3400_p11 = scmp.lt.s32.totalorder %s3846_s0, %s3398_s16 }
  0x54   : > { %p3395_p1 = pnand %p3393_p8, %p3863_p13  ;;  %p3401_p6 = scmp.lt.s32.totalorder %s3399_s4, %s3392_s21 }
  0x56   : > { %p3396_p0 = pneg %p3395_p1  ;;  %p3402_p4 = por %p3401_p6, %p3400_p11 }
  0x58   : > { %p3403_p5 = pnand %p3402_p4, %p3396_p0 }
  0x5a   : > { %3406 = shalt.err (!%p3403_p5)
}
  0x5b   : > { %3071 = dma.hbm_to_vmem [thread:$0]  (!%p4476_p12), %s3844_s11, 16, %s3846_s0, %s3857_s5  }
  0x5c   : > { %s4478_s7 = sadd.s32 1, %s3631_s23  ;;  %p4479_p2 = scmp.ne.s32.totalorder %s4474_s9, 0 }
  0x5d   : > { %s2930_s17 = sshll.u32 %s3639_s25, 11  ;;  %s4481_s21 = sshll.u32 %s3832_s18, 7 }
  0x5e   : > { %s3892_s28 = scalar_select %p4479_p2, %s3631_s23, %s4478_s7  }
  0x5f   : > { %s587_s2 = scalar_lea.vmem [#allocation9], %s4481_s21  ;;  %s4482_s10 = sld [smem:[#allocation32_spill]] }
  0x60   : > { %4480 = sst [smem:[#allocation21_spill]] %s3892_s28  ;;  %s594_s16 = sshll.u32 %s587_s2, 4  ;;  %s3904_s16 = int_to_ptr.vmem [resolvable:$true] %s594_s16 }
  0x65   : > { %s3902_s26 = scalar_lea.hbm %s4482_s10, %s2930_s17  ;;  %s3412_s7 = scalar_lea.hbm %s4482_s10, 4096 }
  0x66   : > { %s3407_s0 = scalar_lea.hbm %s3902_s26, 2048  ;;  %p3413_p7 = scmp.lt.u32.totalorder %s3902_s26, %s4482_s10 }
  0x67   : > { %p3408_p11 = scmp.ne.s32.totalorder %s3902_s26, %s3407_s0  ;;  %p3414_p9 = scmp.lt.u32.totalorder %s3412_s7, %s3407_s0 }
  0x68   : > { %p3416_p3 = scmp.lt.u32.totalorder %s3407_s0, %s3902_s26 }
  0x69   : > { %p3410_p0 = pnand %p3408_p11, %p3863_p13  ;;  %p3415_p10 = por %p3414_p9, %p3413_p7 }
  0x6b   : > { %p3411_p6 = pneg %p3410_p0  ;;  %p3417_p8 = por %p3416_p3, %p3415_p10 }
  0x6d   : > { %p3418_p1 = pnand %p3417_p8, %p3411_p6 }
  0x6f   : > { %3421 = shalt.err (!%p3418_p1)
}
  0x70   : > { %s3422_s8 = scalar_lea.vmem %s3904_s16, 2048  ;;  %s3647_s4 = smov [#allocation9]  }
  0x71   : > { %p3423_p4 = scmp.ne.s32.totalorder %s3904_s16, %s3422_s8  ;;  %s3427_s9 = sshll.u32 %s3647_s4, 4  ;;  %s3428_s9 = int_to_ptr.vmem [resolvable:$false] %s3427_s9 }
  0x72   : > { %s3429_s11 = scalar_lea.vmem %s3428_s9, 4096  ;;  %p3430_p11 = scmp.lt.s32.totalorder %s3904_s16, %s3428_s9 }
  0x73   : > { %p3425_p5 = pnand %p3423_p4, %p3863_p13  ;;  %p3431_p0 = scmp.lt.s32.totalorder %s3429_s11, %s3422_s8 }
  0x75   : > { %p3426_p2 = pneg %p3425_p5  ;;  %p3432_p7 = por %p3431_p0, %p3430_p11 }
  0x77   : > { %p3433_p9 = pnand %p3432_p7, %p3426_p2 }
  0x79   : > { %3436 = shalt.err (!%p3433_p9)
}
  0x7a   : > { %s3648_s0 = smov 128   ;;  %s3649_s7 = smov 8  }
  0x7b   : > { %3074 = dma.hbm_to_vmem [thread:$0]  (!%p4476_p12), %s3902_s26, 2048, %s3904_s16, %s3857_s5, %s3648_s0, %s3648_s0, %s3649_s7  }
  0x7c   : > { %s4483_s12 = sld [smem:[#allocation34_spill]]  ;;  %s4484_s8 = sshll.u32 %s3832_s18, 7 }
  0x7d   : > { %s615_s9 = scalar_lea.vmem [#allocation10], %s4484_s8 }
  0x7e   : > { %s622_s11 = sshll.u32 %s615_s9, 4  ;;  %s3937_s11 = int_to_ptr.vmem [resolvable:$true] %s622_s11 }
  0x82   : > { %s3933_s4 = scalar_lea.hbm %s4483_s12, %s2930_s17  ;;  %s3442_s0 = scalar_lea.hbm %s4483_s12, 4096 }
  0x83   : > { %s3437_s10 = scalar_lea.hbm %s3933_s4, 2048  ;;  %p3443_p8 = scmp.lt.u32.totalorder %s3933_s4, %s4483_s12 }
  0x84   : > { %p3438_p6 = scmp.ne.s32.totalorder %s3933_s4, %s3437_s10  ;;  %p3444_p1 = scmp.lt.u32.totalorder %s3442_s0, %s3437_s10 }
  0x85   : > { %p3446_p5 = scmp.lt.u32.totalorder %s3437_s10, %s3933_s4 }
  0x86   : > { %p3440_p10 = pnand %p3438_p6, %p3863_p13  ;;  %p3445_p4 = por %p3444_p1, %p3443_p8 }
  0x88   : > { %p3441_p3 = pneg %p3440_p10  ;;  %p3447_p2 = por %p3446_p5, %p3445_p4 }
  0x8a   : > { %p3448_p11 = pnand %p3447_p2, %p3441_p3 }
  0x8c   : > { %3451 = shalt.err (!%p3448_p11)
}
  0x8d   : > { %s3452_s21 = scalar_lea.vmem %s3937_s11, 2048  ;;  %s3650_s2 = smov [#allocation10]  }
  0x8e   : > { %p3453_p0 = scmp.ne.s32.totalorder %s3937_s11, %s3452_s21  ;;  %s3457_s8 = sshll.u32 %s3650_s2, 4  ;;  %s3458_s8 = int_to_ptr.vmem [resolvable:$false] %s3457_s8 }
  0x8f   : > { %s3459_s9 = scalar_lea.vmem %s3458_s8, 4096  ;;  %p3460_p6 = scmp.lt.s32.totalorder %s3937_s11, %s3458_s8 }
  0x90   : > { %p3455_p7 = pnand %p3453_p0, %p3863_p13  ;;  %p3461_p10 = scmp.lt.s32.totalorder %s3459_s9, %s3452_s21 }
  0x92   : > { %p3456_p9 = pneg %p3455_p7  ;;  %p3462_p8 = por %p3461_p10, %p3460_p6 }
  0x94   : > { %p3463_p1 = pnand %p3462_p8, %p3456_p9 }
  0x96   : > { %3466 = shalt.err (!%p3463_p1)
}
  0x97   : > { %s3651_s10 = smov 64   ;;  %s3652_s26 = smov 4  }
  0x98   : > { %3077 = dma.hbm_to_vmem [thread:$0]  (!%p4476_p12), %s3933_s4, 2048, %s3937_s11, %s3857_s5, %s3651_s10, %s3651_s10, %s3652_s26  }
  0x99   : > { %s4485_s14 = sld [smem:[#allocation36_spill]]  ;;  %s641_s7 = scalar_lea.vmem [#allocation11], %s3832_s18 }
  0x9a   : > { %s648_s21 = sshll.u32 %s641_s7, 4  ;;  %s3653_s2 = smov [#allocation6]   ;;  %s3968_s21 = int_to_ptr.vmem [resolvable:$true] %s648_s21 }
  0x9b   : > { %s520_s8 = sshll.u32 %s3653_s2, 4  ;;  %s521_s8 = int_to_ptr.vmem [resolvable:$true] %s520_s8 }
  0x9f   : > { %s3965_s17 = scalar_lea.hbm %s4485_s14, %s3835_s13  ;;  %s3472_s10 = scalar_lea.hbm %s4485_s14, 32 }
  0xa0   : > { %s3467_s9 = scalar_lea.hbm %s3965_s17, 16  ;;  %p3473_p2 = scmp.lt.u32.totalorder %s3965_s17, %s4485_s14 }
  0xa1   : > { %p3468_p3 = scmp.ne.s32.totalorder %s3965_s17, %s3467_s9  ;;  %p3474_p11 = scmp.lt.u32.totalorder %s3472_s10, %s3467_s9 }
  0xa2   : > { %p3476_p7 = scmp.lt.u32.totalorder %s3467_s9, %s3965_s17 }
  0xa3   : > { %p3470_p4 = pnand %p3468_p3, %p3863_p13  ;;  %p3475_p0 = por %p3474_p11, %p3473_p2 }
  0xa5   : > { %p3471_p5 = pneg %p3470_p4  ;;  %p3477_p9 = por %p3476_p7, %p3475_p0 }
  0xa7   : > { %p3478_p6 = pnand %p3477_p9, %p3471_p5 }
  0xa9   : > { %3481 = shalt.err (!%p3478_p6)
}
  0xaa   : > { %s3482_s0 = scalar_lea.vmem %s3968_s21, 16  ;;  %s3654_s7 = smov [#allocation11]  }
  0xab   : > { %p3483_p10 = scmp.ne.s32.totalorder %s3968_s21, %s3482_s0  ;;  %s3487_s2 = sshll.u32 %s3654_s7, 4  ;;  %s3488_s2 = int_to_ptr.vmem [resolvable:$false] %s3487_s2 }
  0xac   : > { %s3489_s4 = scalar_lea.vmem %s3488_s2, 32  ;;  %p3490_p3 = scmp.lt.s32.totalorder %s3968_s21, %s3488_s2 }
  0xad   : > { %p3485_p8 = pnand %p3483_p10, %p3863_p13  ;;  %p3491_p4 = scmp.lt.s32.totalorder %s3489_s4, %s3482_s0 }
  0xaf   : > { %p3486_p1 = pneg %p3485_p8  ;;  %p3492_p2 = por %p3491_p4, %p3490_p3 }
  0xb1   : > { %p3493_p11 = pnand %p3492_p2, %p3486_p1 }
  0xb3   : > { %3496 = shalt.err (!%p3493_p11)
}
  0xb4   : > { %3080 = dma.hbm_to_vmem [thread:$0]  (!%p4476_p12), %s3965_s17, 16, %s3968_s21, %s3857_s5  }
  0xb5   : > { %s4486_s3 = sld [smem:[#allocation25_spill]]  ;;  %p4487_p0 = scmp.ne.s32.totalorder %s4469_s19, 0 }
  0xb7   : > { %p4488_p7 = pneg %p4487_p0 }
  0xbb   : > { %s3497_s10 = scalar_lea.hbm %s4486_s3, 16 }
  0xbc   : > { %p3498_p5 = scmp.ne.s32.totalorder %s4486_s3, %s3497_s10  ;;  %p3504_p10 = scmp.lt.u32.totalorder %s3497_s10, %s4486_s3 }
  0xbe   : > { %p3500_p9 = pnand %p3498_p5, %p4488_p7 }
  0xc0   : > { %p3501_p6 = pneg %p3500_p9 }
  0xc2   : > { %p3506_p8 = pnand %p3504_p10, %p3501_p6 }
  0xc4   : > { %3509 = shalt.err (!%p3506_p8)
}
  0xc5   : > { %s3510_s17 = scalar_lea.vmem %s521_s8, 16  ;;  %p4489_p3 = pmov %p4488_p7 }
  0xc6   : > { %p3511_p1 = scmp.ne.s32.totalorder %s521_s8, %s3510_s17  ;;  %s3517_s21 = scalar_lea.vmem %s521_s8, 32 }
  0xc7   : > { %p3518_p11 = scmp.lt.s32.totalorder %s521_s8, %s521_s8  ;;  %p3519_p12 = scmp.lt.s32.totalorder %s3517_s21, %s3510_s17 }
  0xc8   : > { %p3513_p4 = pnand %p3511_p1, %p4489_p3 }
  0xc9   : > { %p3520_p13 = por %p3519_p12, %p3518_p11 }
  0xca   : > { %p3514_p2 = pneg %p3513_p4 }
  0xcc   : > { %p3521_p5 = pnand %p3520_p13, %p3514_p2 }
  0xce   : > { %3524 = shalt.err (!%p3521_p5)
}
  0xcf   : > { %3067 = dma.hbm_to_vmem [thread:$0]  (!%p4487_p0), %s4486_s3, 16, %s521_s8, [#allocation7]  }
  0xd0   : > { %s4490_s15 = sld [smem:[#allocation37_spill]]  ;;  %s658_s26 = scalar_lea.vmem [#allocation12], %s3832_s18 }
  0xd1   : > { %s665_s16 = sshll.u32 %s658_s26, 4  ;;  %p4491_p13 = scmp.ne.s32.totalorder %s4477_s1, 0  ;;  %s666_s16 = int_to_ptr.vmem [resolvable:$true] %s665_s16 }
  0xd6   : > { %s4016_s10 = scalar_lea.hbm %s4490_s15, %s3835_s13  ;;  %s3530_s8 = scalar_lea.hbm %s4490_s15, 32 }
  0xd7   : > { %s3525_s19 = scalar_lea.hbm %s4016_s10, 16  ;;  %p3531_p0 = scmp.lt.u32.totalorder %s4016_s10, %s4490_s15 }
  0xd8   : > { %p3526_p12 = scmp.ne.s32.totalorder %s4016_s10, %s3525_s19  ;;  %p3532_p6 = scmp.lt.u32.totalorder %s3530_s8, %s3525_s19 }
  0xd9   : > { %p3534_p8 = scmp.lt.u32.totalorder %s3525_s19, %s4016_s10 }
  0xda   : > { %p3528_p7 = pnand %p3526_p12, %p4491_p13  ;;  %p3533_p10 = por %p3532_p6, %p3531_p0 }
  0xdc   : > { %p3529_p9 = pneg %p3528_p7  ;;  %p3535_p1 = por %p3534_p8, %p3533_p10 }
  0xde   : > { %p3536_p3 = pnand %p3535_p1, %p3529_p9 }
  0xe0   : > { %3539 = shalt.err (!%p3536_p3)
}
  0xe1   : > { %s3540_s18 = scalar_lea.vmem %s666_s16, 16  ;;  %s3655_s13 = smov [#allocation12]  }
  0xe2   : > { %p3541_p4 = scmp.ne.s32.totalorder %s666_s16, %s3540_s18  ;;  %s3545_s2 = sshll.u32 %s3655_s13, 4  ;;  %s3546_s2 = int_to_ptr.vmem [resolvable:$false] %s3545_s2 }
  0xe3   : > { %s3547_s4 = scalar_lea.vmem %s3546_s2, 32  ;;  %p3548_p5 = scmp.lt.s32.totalorder %s666_s16, %s3546_s2 }
  0xe4   : > { %p3543_p2 = pnand %p3541_p4, %p4491_p13  ;;  %p3549_p12 = scmp.lt.s32.totalorder %s3547_s4, %s3540_s18 }
  0xe6   : > { %p3544_p11 = pneg %p3543_p2  ;;  %p3550_p7 = por %p3549_p12, %p3548_p5 }
  0xe8   : > { %p3551_p0 = pnand %p3550_p7, %p3544_p11 }
  0xea   : > { %3554 = shalt.err (!%p3551_p0)
}
  0xeb   : > { %p4492_p6 = scmp.ne.s32.totalorder %s4470_s20, 0  ;;  %p4493_p9 = scmp.ne.s32.totalorder %s4468_s30, 0 }
  0xec   : > { %p4494_p13 = scmp.eq.s32.totalorder (!%p4493_p9), %s3774_s27, 0 }
  0xed   : > { %3083 = dma.hbm_to_vmem [thread:$0]  (!%p4492_p6), %s4016_s10, 16, %s666_s16, %s3857_s5  }
  0xee   : > { %674 = sbr.rel (%p4493_p9) target bundleno = 3008 (0xbc0), region = 84 }
  0xf5   : > { %3606 = dma.done.wait (%p4494_p13), [#allocation4], 16   ;;  %p4495_p10 = pmov %p4494_p13 }
  0xf7   : > { %3608 = vsyncadd (%p4495_p10), [#allocation4], 4294967280  ;;  %p4496_p8 = pmov %p4495_p10 }
  0xf9   : > { %3610 = dma.done.wait (%p4496_p8), [#allocation7], 16   ;;  %p4497_p1 = pmov %p4496_p8 }
  0xfa   : > { %s684_s20 = sand.u32 1, %s3774_s27   ;;  %s4049_s5 = sand.u32 1, %s3627_s22  }
  0xfb   : > { %3612 = vsyncadd (%p4497_p1), [#allocation7], 4294967280  ;;  %s685_s30 = scalar_lea.sflag [#allocation4], %s684_s20  ;;  %p4498_p3 = scmp.ne.s32.totalorder %s4467_s29, 0 }
  0xfd   : > { %3614 = dma.done.wait (%p4498_p3), %s685_s30, 4144  }
  0xfe   : > { %3616 = vsyncadd (%p4498_p3), %s685_s30, 4294963152  ;;  %s2810_s9 = sshll.u32 %s4049_s5, 7  ;;  %p832_p4 = scmp.lt.s32.totalorder %s3635_s24, 1 }
  0xff   : > { %s4499_s6 = sld [smem:[#allocation28_spill]]  ;;  %s4500_s17 = sld [smem:[#allocation26_spill]] }
 0x100   : > { %s4059_s11 = scalar_select %p832_p4, %s3635_s24, 1 }
 0x101   : > { %s4501_s2 = sld [smem:[#allocation29_spill]]  ;;  %s4502_s1 = sld [smem:[#allocation27_spill]] }
 0x102   : > { %s3037_s10 = smul.u32 384, %s4059_s11  ;;  %s2932_s26 = sshll.u32 %s4059_s11, 7 }
 0x103   : > { %s3038_s29 = smul.u32 6, %s4059_s11  ;;  %s4503_s15 = sld [smem:[#allocation31_spill]] }
 0x104   : > { %s4504_s25 = sld [smem:[#allocation35_spill]]  ;;  %s4097_s18 = scalar_lea.vmem [#allocation9], %s2810_s9 }
 0x105   : > { %s4067_s0 = scalar_lea.vmem %s4499_s6, %s2932_s26  ;;  %s4072_s21 = scalar_lea.vmem %s4500_s17, %s3037_s10 }
 0x106   : > { %s2815_s26 = sshll.u32 %s4059_s11, 1  ;;  %s4505_s17 = sld [smem:[#allocation33_spill]] }
 0x107   : > { %s848_s4 = scalar_lea.vmem %s4501_s2, %s4059_s11  ;;  %s4081_s3 = scalar_lea.vmem %s4502_s1, %s3038_s29 }
 0x108   : > { %s4099_s13 = scalar_lea.vmem [#allocation10], %s2810_s9  ;;  %s713_s1 = scalar_lea.vmem [#allocation11], %s4049_s5 }
 0x109   : > { %s851_s16 = scalar_lea.vmem %s4503_s15, %s4059_s11  ;;  %s721_s29 = scalar_lea.vmem [#allocation12], %s4049_s5 }
 0x10a   : > { %s858_s7 = scalar_lea.vmem %s4504_s25, %s4059_s11  ;;  %p2816_p2 = scmp.ne.s32.totalorder %s3635_s24, 0 }
 0x10b   : > { %s4506_s15 = sld [smem:[#allocation22_spill]] (!%p2816_p2)  ;;  %v2817_v33 = vld [vmem:[#allocation3] ss:$0 sm:$0xff] (!%p2816_p2)  ;;  %v2818_v35 = vld [vmem:[#allocation6] ss:$0 sm:$0xff] (!%p2816_p2) }
 0x10c   : > { %s4095_s28 = scalar_lea.vmem %s4505_s17, %s2815_s26  ;;  %864 = sbr.rel (%p2816_p2) target bundleno = 594 (0x252), region = 116 }
 0x111   : > { %v865_v0 = vld [vmem:[%s4506_s15] sm:$0xff] (!%p2816_p2)  ;;  %v867_v1 = vld [vmem:[%s4506_s15 + $0x10] sm:$0xff] (!%p2816_p2)  ;;  %v866_v2 = vld [vmem:[%s4506_s15 + $0x8] sm:$0xff] (!%p2816_p2) }
 0x112   : > { %871 = vadd.xlane.f32.xlu0 (!%p2816_p2), %v865_v0  ;;  %875 = vadd.xlane.f32.xlu1 (!%p2816_p2), %v867_v1  ;;  %v868_v3 = vld [vmem:[%s4506_s15 + $0x18] sm:$0xff] (!%p2816_p2) }
 0x116   : > { %873 = vadd.xlane.f32.xlu0 %v866_v2  ;;  %877 = vadd.xlane.f32.xlu1 %v868_v3 }
 0x19f   : > { %v872_v4 = vpop.xlane.xlu0 %871  ;;  %v876_v5 = vpop.xlane.xlu1 %875 }
 0x1a0   : > { %v880_v6 = vmul.f32 0.0078125, %v872_v4  ;;  %v882_v7 = vmul.f32 0.0078125, %v876_v5 }
 0x1a2   : > { %v884_v8 = vsub.f32 %v865_v0, %v880_v6  ;;  %v886_v9 = vsub.f32 %v867_v1, %v882_v7 }
 0x1a3   : > { %v874_v10 = vpop.xlane.xlu0 %873  ;;  %v878_v11 = vpop.xlane.xlu1 %877 }
 0x1a4   : > { %v881_v12 = vmul.f32 0.0078125, %v874_v10  ;;  %v888_v13 = vmul.f32 %v884_v8, %v884_v8  ;;  %v883_v14 = vmul.f32 0.0078125, %v878_v11  ;;  %v890_v17 = vmul.f32 %v886_v9, %v886_v9 }
 0x1a6   : > { %v885_v15 = vsub.f32 %v866_v2, %v881_v12  ;;  %892 = vadd.xlane.f32.xlu0 %v888_v13  ;;  %v887_v16 = vsub.f32 %v868_v3, %v883_v14 }
 0x1a8   : > { %v889_v18 = vmul.f32 %v885_v15, %v885_v15  ;;  %v891_v19 = vmul.f32 %v887_v16, %v887_v16 }
 0x1aa   : > { %896 = vadd.xlane.f32.xlu0 %v890_v17  ;;  %894 = vadd.xlane.f32.xlu1 %v889_v18 }
 0x1ae   : > { %898 = vadd.xlane.f32.xlu1 %v891_v19 }
 0x233   : > { %v893_v20 = vpop.xlane.xlu0 %892 }
 0x234   : > { %v900_v21 = vmul.f32 0.0078125, %v893_v20 }
 0x236   : > { %v904_v22 = vadd.f32 1e-05, %v900_v21 }
 0x237   : > { %v895_v23 = vpop.xlane.xlu1 %894  ;;  %v897_v24 = vpop.xlane.xlu0 %896 }
 0x238   : > { %3149 = vrsqrt.f32 %v904_v22  ;;  %v901_v25 = vmul.f32 0.0078125, %v895_v23  ;;  %v902_v26 = vmul.f32 0.0078125, %v897_v24 }
 0x23a   : > { %v905_v27 = vadd.f32 1e-05, %v901_v25  ;;  %v906_v28 = vadd.f32 1e-05, %v902_v26 }
 0x23b   : > { %v899_v29 = vpop.xlane.xlu1 %898 }
 0x23c   : > { %3151 = vrsqrt.f32 %v905_v27  ;;  %v903_v30 = vmul.f32 0.0078125, %v899_v29 }
 0x23d   : > { %3153 = vrsqrt.f32 %v906_v28 }
 0x23e   : > { %v907_v31 = vadd.f32 1e-05, %v903_v30 }
 0x240   : > { %3155 = vrsqrt.f32 %v907_v31 }
 0x242   : > { %v3150_v32 = vpop.eup %3149 }
 0x243   : > { %v912_v34 = vmul.f32 %v3150_v32, %v884_v8 }
 0x245   : > { %v922_v36 = vmul.f32 %v2817_v33, %v912_v34 }
 0x246   : > { %v3152_v37 = vpop.eup %3151 }
 0x247   : > { %v3154_v38 = vpop.eup %3153  ;;  %v932_v39 = vadd.f32 %v2818_v35, %v922_v36  ;;  %v913_v40 = vmul.f32 %v3152_v37, %v885_v15 }
 0x248   : > { %v914_v41 = vmul.f32 %v3154_v38, %v886_v9 }
 0x249   : > { %936 = vst [vmem:[#allocation2] sm:$0xff] %v932_v39  ;;  %v923_v42 = vmul.f32 %v2817_v33, %v913_v40 }
 0x24a   : > { %v3156_v43 = vpop.eup %3155  ;;  %v924_v44 = vmul.f32 %v2817_v33, %v914_v41 }
 0x24b   : > { %v933_v45 = vadd.f32 %v2818_v35, %v923_v42  ;;  %v915_v46 = vmul.f32 %v3156_v43, %v887_v16 }
 0x24c   : > { %v934_v47 = vadd.f32 %v2818_v35, %v924_v44 }
 0x24d   : > { %937 = vst [vmem:[#allocation2 + $0x8] sm:$0xff] %v933_v45  ;;  %v925_v48 = vmul.f32 %v2817_v33, %v915_v46 }
 0x24e   : > { %938 = vst [vmem:[#allocation2 + $0x10] sm:$0xff] %v934_v47 }
 0x24f   : > { %v935_v49 = vadd.f32 %v2818_v35, %v925_v48 }
 0x251   : > { %939 = vst [vmem:[#allocation2 + $0x18] sm:$0xff] %v935_v49 }
 0x252 PF: > { %v3157_v50 = vld [vmem:[%s4072_s21 + $0x4] ss:$24 sps:$4 sm:$0xff]   ;;  %v3159_v51 = vld [vmem:[%s4072_s21] ss:$24 sps:$4 sm:$0xff]   ;;  %v3656_v52 = vmov 0   ;;  %v1000_v41 = vlaneseq  ;;  %s4507_s26 = sld [smem:[#allocation23_spill]] }
 0x253   : > { %1302 = vmatprep.mubr.bf16.mxu0 %v3656_v52  ;;  %1355 = vmatprep.mubr.bf16.mxu1 %v3656_v52  ;;  %v3160_v53 = vld [vmem:[%s4072_s21 + $0x34] ss:$24 sps:$4 sm:$0xff]   ;;  %v3162_v54 = vld [vmem:[%s4072_s21 + $0x30] ss:$24 sps:$4 sm:$0xff]   ;;  %v3163_v55 = vld [vmem:[%s4072_s21 + $0x64] ss:$24 sps:$4 sm:$0xff]  }
 0x254   : > { %1270 = vmatprep.subr.bf16.mxu0 %v3157_v50  ;;  %v3165_v56 = vld [vmem:[%s4072_s21 + $0x60] ss:$24 sps:$4 sm:$0xff]   ;;  %v3166_v57 = vld [vmem:[%s4072_s21 + $0x94] ss:$24 sps:$4 sm:$0xff]   ;;  %v3168_v58 = vld [vmem:[%s4072_s21 + $0x90] ss:$24 sps:$4 sm:$0xff]  }
 0x255   : > { %1271 = vmatpush1.bf16.msra.mxu0 %v3159_v51  ;;  %v3169_v59 = vld [vmem:[%s4072_s21 + $0xc4] ss:$24 sps:$4 sm:$0xff]   ;;  %v3171_v61 = vld [vmem:[%s4072_s21 + $0xc0] ss:$24 sps:$4 sm:$0xff]   ;;  %v3172_v63 = vld [vmem:[%s4072_s21 + $0xf4] ss:$24 sps:$4 sm:$0xff]  }
 0x256   : > { %1272 = vmatprep.subr.bf16.mxu0 %v3160_v53  ;;  %v3187_v60 = vld [vmem:[%s4072_s21 + $0xc] ss:$24 sps:$4 sm:$0xff]   ;;  %v3189_v62 = vld [vmem:[%s4072_s21 + $0x8] ss:$24 sps:$4 sm:$0xff]   ;;  %v3193_v0 = vld [vmem:[%s4072_s21 + $0x3c] ss:$24 sps:$4 sm:$0xff]  }
 0x257   : > { %1323 = vmatprep.subr.bf16.mxu1 %v3187_v60  ;;  %v3195_v1 = vld [vmem:[%s4072_s21 + $0x38] ss:$24 sps:$4 sm:$0xff]   ;;  %v3175_v3 = vld [vmem:[%s4072_s21 + $0x124] ss:$24 sps:$4 sm:$0xff]   ;;  %v3201_v5 = vld [vmem:[%s4072_s21 + $0x68] ss:$24 sps:$4 sm:$0xff]  }
 0x258   : > { %1324 = vmatpush1.bf16.msra.mxu1 %v3189_v62  ;;  %v3174_v2 = vld [vmem:[%s4072_s21 + $0xf0] ss:$24 sps:$4 sm:$0xff]   ;;  %v3199_v4 = vld [vmem:[%s4072_s21 + $0x6c] ss:$24 sps:$4 sm:$0xff]   ;;  %v3177_v6 = vld [vmem:[%s4072_s21 + $0x120] ss:$24 sps:$4 sm:$0xff]   ;;  %s4508_s19 = smov %s4507_s26 }
 0x259   : > { %1273 = vmatpush1.bf16.msra.mxu0 %v3162_v54  ;;  %1325 = vmatprep.subr.bf16.mxu1 %v3193_v0  ;;  %v3205_v7 = vld [vmem:[%s4072_s21 + $0x9c] ss:$24 sps:$4 sm:$0xff]   ;;  %v3207_v9 = vld [vmem:[%s4072_s21 + $0x98] ss:$24 sps:$4 sm:$0xff]   ;;  %v3211_v11 = vld [vmem:[%s4072_s21 + $0xcc] ss:$24 sps:$4 sm:$0xff]  }
 0x25a   : > { %1274 = vmatprep.subr.bf16.mxu0 %v3163_v55  ;;  %v3178_v8 = vld [vmem:[%s4072_s21 + $0x154] ss:$24 sps:$4 sm:$0xff]   ;;  %v3180_v10 = vld [vmem:[%s4072_s21 + $0x150] ss:$24 sps:$4 sm:$0xff]   ;;  %v4143_v12 = vld [vmem:[#allocation2] sm:$0xff]  ;;  %v4182_v42 = vshrl.u32 %v1000_v41, 7 }
 0x25b   : > { %v4145_v13 = vld [vmem:[#allocation2 + $0x8] sm:$0xff]  ;;  %v3217_v17 = vld [vmem:[%s4072_s21 + $0xfc] ss:$24 sps:$4 sm:$0xff]   ;;  %v3184_v20 = vld [vmem:[%s4072_s21 + $0x40] ss:$24 sps:$4 sm:$0xff]   ;;  %vm1492_vm0 = vcmask 261120  }
 0x25c   : > { %1326 = vmatpush1.bf16.msra.mxu1 %v3195_v1  ;;  %v3183_v14 = vld [vmem:[%s4072_s21 + $0x14] ss:$24 sps:$4 sm:$0xff]   ;;  %v3213_v15 = vld [vmem:[%s4072_s21 + $0xc8] ss:$24 sps:$4 sm:$0xff]   ;;  %v996_v16 = vpack.c.bf16 %v4145_v13, %v4143_v12  ;;  %v3186_v19 = vld [vmem:[%s4072_s21 + $0x44] ss:$24 sps:$4 sm:$0xff]  }
 0x25d   : > { %1275 = vmatpush1.bf16.msra.mxu0 %v3165_v56  ;;  %1327 = vmatprep.subr.bf16.mxu1 %v3199_v4  ;;  %v3181_v18 = vld [vmem:[%s4072_s21 + $0x10] ss:$24 sps:$4 sm:$0xff]   ;;  %v4157_v22 = vld [vmem:[#allocation2 + $0x18] sm:$0xff]  ;;  %v3223_v24 = vld [vmem:[%s4072_s21 + $0x12c] ss:$24 sps:$4 sm:$0xff]   ;;  %v1002_v43 = vsub.s32 0, %v4182_v42 }
 0x25e   : > { %1276 = vmatprep.subr.bf16.mxu0 %v3166_v57  ;;  %v4155_v21 = vld [vmem:[#allocation2 + $0x10] sm:$0xff]  ;;  %v3225_v26 = vld [vmem:[%s4072_s21 + $0x128] ss:$24 sps:$4 sm:$0xff]   ;;  %v3198_v30 = vld [vmem:[%s4072_s21 + $0xa4] ss:$24 sps:$4 sm:$0xff]   ;;  %v1006_v45 = vsub.s32 1, %v4182_v42 }
 0x25f   : > { %v3219_v23 = vld [vmem:[%s4072_s21 + $0xf8] ss:$24 sps:$4 sm:$0xff]   ;;  %v3192_v25 = vld [vmem:[%s4072_s21 + $0x74] ss:$24 sps:$4 sm:$0xff]   ;;  %v997_v29 = vpack.c.bf16 %v4157_v22, %v4155_v21  ;;  %v3210_v35 = vld [vmem:[%s4072_s21 + $0x104] ss:$24 sps:$4 sm:$0xff]  }
 0x260   : > { %1328 = vmatpush1.bf16.msra.mxu1 %v3201_v5  ;;  %v3226_v27 = vld [vmem:[%s4072_s21 + $0x15c] ss:$24 sps:$4 sm:$0xff]   ;;  %v3190_v28 = vld [vmem:[%s4072_s21 + $0x70] ss:$24 sps:$4 sm:$0xff]   ;;  %v3196_v32 = vld [vmem:[%s4072_s21 + $0xa0] ss:$24 sps:$4 sm:$0xff]  }
 0x261   : > { %1277 = vmatpush1.bf16.msra.mxu0 %v3168_v58  ;;  %1329 = vmatprep.subr.bf16.mxu1 %v3205_v7  ;;  %v3228_v31 = vld [vmem:[%s4072_s21 + $0x158] ss:$24 sps:$4 sm:$0xff]   ;;  %v3204_v33 = vld [vmem:[%s4072_s21 + $0xd4] ss:$24 sps:$4 sm:$0xff]   ;;  %v3222_v39 = vld [vmem:[%s4072_s21 + $0x164] ss:$24 sps:$4 sm:$0xff]  }
 0x262   : > { %1278 = vmatprep.subr.bf16.mxu0 %v3169_v59  ;;  %v3202_v34 = vld [vmem:[%s4072_s21 + $0xd0] ss:$24 sps:$4 sm:$0xff]   ;;  %v3208_v36 = vld [vmem:[%s4072_s21 + $0x100] ss:$24 sps:$4 sm:$0xff]   ;;  %v3216_v37 = vld [vmem:[%s4072_s21 + $0x134] ss:$24 sps:$4 sm:$0xff]  }
 0x263   : > { %v3214_v38 = vld [vmem:[%s4072_s21 + $0x130] ss:$24 sps:$4 sm:$0xff]   ;;  %v3220_v40 = vld [vmem:[%s4072_s21 + $0x160] ss:$24 sps:$4 sm:$0xff]   ;;  %v1010_v59 = vsub.s32 2, %v4182_v42  ;;  %p2925_p11 = scmp.ne.s32.totalorder %s3635_s24, 1 }
 0x264   : > { %1330 = vmatpush1.bf16.msra.mxu1 %v3207_v9  ;;  %v4186_v44 = vld [vmem:[%s4081_s3] sm:$0x3f] }
 0x265   : > { %1279 = vmatpush1.bf16.msra.mxu0 %v3171_v61  ;;  %1331 = vmatprep.subr.bf16.mxu1 %v3211_v11  ;;  %v1003_v46 = vrot.slane %v4186_v44, %v1002_v43  ;;  %v1007_v48 = vrot.slane %v4186_v44, %v1006_v45  ;;  %v1014_v61 = vsub.s32 3, %v4182_v42  ;;  %v1011_v4 = vrot.slane %v4186_v44, %v1010_v59 }
 0x266   : > { %1280 = vmatprep.subr.bf16.mxu0 %v3172_v63 }
 0x268   : > { %1332 = vmatpush1.bf16.msra.mxu1 %v3213_v15 }
 0x269   : > { %1281 = vmatpush1.bf16.msra.mxu0 %v3174_v2  ;;  %1333 = vmatprep.subr.bf16.mxu1 %v3217_v17 }
 0x26a   : > { %1282 = vmatprep.subr.bf16.mxu0 %v3175_v3 }
 0x26c   : > { %1334 = vmatpush1.bf16.msra.mxu1 %v3219_v23 }
 0x26d   : > { %1283 = vmatpush1.bf16.msra.mxu0 %v3177_v6  ;;  %1335 = vmatprep.subr.bf16.mxu1 %v3223_v24  ;;  %v1015_v6 = vrot.slane %v4186_v44, %v1014_v61 }
 0x26e   : > { %1284 = vmatprep.subr.bf16.mxu0 %v3178_v8 }
 0x270   : > { %1336 = vmatpush1.bf16.msra.mxu1 %v3225_v26 }
 0x271   : > { %1285 = vmatpush1.bf16.msra.mxu0 %v3180_v10  ;;  %1337 = vmatprep.subr.bf16.mxu1 %v3226_v27 }
 0x272   : > { %1376 = vmatprep.subr.bf16.mxu0 %v3183_v14 }
 0x274   : > { %1303 = vmatmul.mubr.bf16.vlgmr.msra.gmra.mrb[0].mxu0 %v996_v16  ;;  %1338 = vmatpush1.bf16.msra.mxu1 %v3228_v31  ;;  %v1018_v31 = vsub.s32 4, %v4182_v42 }
 0x275   : > { %1377 = vmatpush1.bf16.msra.mxu0 %v3181_v18  ;;  %1312 = vmatprep.mubr.bf16.mxu0 %v3656_v52 }
 0x276   : > { %1378 = vmatprep.subr.bf16.mxu0 %v3186_v19 }
 0x277   : > { %1356 = vmatmul.mubr.bf16.vlgmr.msra.gmra.mrb[0].mxu1 %v996_v16 }
 0x278   : > { %1365 = vmatprep.mubr.bf16.mxu1 %v3656_v52 }
 0x279   : > { %1379 = vmatpush1.bf16.msra.mxu0 %v3184_v20 }
 0x27a   : > { %1380 = vmatprep.subr.bf16.mxu0 %v3192_v25 }
 0x27c   : > { %1313 = vmatmul.mubr.bf16.gmra.mrb[4].mxu0 %v997_v29 }
 0x27d   : > { %1381 = vmatpush1.bf16.msra.mxu0 %v3190_v28  ;;  %1408 = vmatprep.mubr.bf16.mxu0 %v3656_v52 }
 0x27e   : > { %1382 = vmatprep.subr.bf16.mxu0 %v3198_v30 }
 0x27f   : > { %1366 = vmatmul.mubr.bf16.gmra.mrb[4].mxu1 %v997_v29 }
 0x281   : > { %1383 = vmatpush1.bf16.msra.mxu0 %v3196_v32 }
 0x282   : > { %1384 = vmatprep.subr.bf16.mxu0 %v3204_v33  ;;  %v1022_v33 = vsub.s32 5, %v4182_v42 }
 0x285   : > { %1385 = vmatpush1.bf16.msra.mxu0 %v3202_v34 }
 0x286   : > { %1386 = vmatprep.subr.bf16.mxu0 %v3210_v35  ;;  %v1019_v35 = vrot.slane %v4186_v44, %v1018_v31 }
 0x289   : > { %1387 = vmatpush1.bf16.msra.mxu0 %v3208_v36 }
 0x28a   : > { %1388 = vmatprep.subr.bf16.mxu0 %v3216_v37  ;;  %v1023_v37 = vrot.slane %v4186_v44, %v1022_v33 }
 0x28d   : > { %1389 = vmatpush1.bf16.msra.mxu0 %v3214_v38 }
 0x28e   : > { %1390 = vmatprep.subr.bf16.mxu0 %v3222_v39 }
 0x291   : > { %1391 = vmatpush1.bf16.msra.mxu0 %v3220_v40 }
 0x294   : > { %1409 = vmatmul.mubr.bf16.vlgmr.msra.gmra.mrb[8].mxu0 %v996_v16 }
 0x295   : > { %1418 = vmatprep.mubr.bf16.mxu0 %v3656_v52 }
 0x29c   : > { %1419 = vmatmul.mubr.bf16.gmra.mrb[12].mxu0 %v997_v29 }
 0x347   : > { %v1304_v47 = vpop.f32.mrb[0].mxu0 }
 0x348   : > { %v1305_v49 = vadd.f32 %v1304_v47, %v1003_v46  ;;  %v1306_v50 = vpop.f32.mrb[1].mxu0 }
 0x349   : > { %v1308_v51 = vpop.f32.mrb[2].mxu0  ;;  %v1307_v55 = vadd.f32 %v1306_v50, %v1007_v48 }
 0x34a   : > { %v1309_v53 = vadd.f32 %v1308_v51, %v1003_v46  ;;  %v1310_v54 = vpop.f32.mrb[3].mxu0  ;;  %v1357_v9 = vpop.f32.mrb[0].mxu1 }
 0x34b   : > { %v1311_v56 = vadd.f32 %v1310_v54, %v1007_v48  ;;  %v1358_v10 = vadd.f32 %v1357_v9, %v1011_v4  ;;  %v1359_v11 = vpop.f32.mrb[1].mxu1 }
 0x34c   : > { %v1429_v57 = vpack.c.bf16 %v1309_v53, %v1305_v49  ;;  %v1360_v14 = vadd.f32 %v1359_v11, %v1015_v6  ;;  %v1361_v15 = vpop.f32.mrb[2].mxu1 }
 0x34d   : > { %v1431_v58 = vpack.c.bf16 %v1311_v56, %v1307_v55  ;;  %v1362_v16 = vadd.f32 %v1361_v15, %v1011_v4  ;;  %v1363_v17 = vpop.f32.mrb[3].mxu1 }
 0x34e   : > { %3009 = vmatprep.mubr.bf16.mxu1 %v1429_v57  ;;  %v1364_v18 = vadd.f32 %v1363_v17, %v1015_v6 }
 0x34f   : > { %v1314_v60 = vpop.f32.mrb[4].mxu0  ;;  %3005 = vmatprep.subr.bf16.mxu1 %v1431_v58  ;;  %v1433_v19 = vpack.c.bf16 %v1362_v16, %v1358_v10  ;;  %v946_v16 = vld [vmem:[%s4508_s19 + $0x10] sm:$0xff] }
 0x350   : > { %v1315_v62 = vadd.f32 %v1314_v60, %v1003_v46  ;;  %v1316_v63 = vpop.f32.mrb[5].mxu0  ;;  %3006 = vmatpush3.bf16.xpose.msra.mxu1 %v1431_v58  ;;  %v1594_v20 = vpack.c.bf16 %v1364_v18, %v1360_v14 }
 0x351   : > { %v1317_v0 = vadd.f32 %v1316_v63, %v1007_v48  ;;  %v1318_v1 = vpop.f32.mrb[6].mxu0  ;;  %v944_v63 = vld [vmem:[%s4507_s26] sm:$0xff] }
 0x352   : > { %v1319_v2 = vadd.f32 %v1318_v1, %v1003_v46  ;;  %v1320_v3 = vpop.f32.mrb[7].mxu0  ;;  %v1367_v23 = vpop.f32.mrb[4].mxu1  ;;  %3025 = vmatprep.mubr.bf16.mxu0 %v1594_v20 }
 0x353   : > { %v1321_v5 = vadd.f32 %v1320_v3, %v1007_v48  ;;  %v1368_v24 = vadd.f32 %v1367_v23, %v1011_v4  ;;  %v1369_v25 = vpop.f32.mrb[5].mxu1  ;;  %v945_v3 = vld [vmem:[%s4508_s19 + $0x8] sm:$0xff]  ;;  %v947_v23 = vld [vmem:[%s4508_s19 + $0x18] sm:$0xff] }
 0x354   : > { %v1430_v7 = vpack.c.bf16 %v1319_v2, %v1315_v62  ;;  %v1370_v26 = vadd.f32 %v1369_v25, %v1015_v6  ;;  %v1371_v27 = vpop.f32.mrb[6].mxu1 }
 0x355   : > { %v1432_v8 = vpack.c.bf16 %v1321_v5, %v1317_v0  ;;  %v1372_v28 = vadd.f32 %v1371_v27, %v1011_v4  ;;  %v1373_v29 = vpop.f32.mrb[7].mxu1 }
 0x356   : > { %v1374_v30 = vadd.f32 %v1373_v29, %v1015_v6 }
 0x357   : > { %3007 = vmatprep.subr.bf16.mxu1 %v1432_v8  ;;  %v1434_v32 = vpack.c.bf16 %v1372_v28, %v1368_v24 }
 0x358   : > { %3008 = vmatpush3.bf16.xpose.msra.mxu1 %v1432_v8  ;;  %v1595_v34 = vpack.c.bf16 %v1374_v30, %v1370_v26 }
 0x359   : > { %3013 = vmatprep.subr.bf16.mxu1 %v1433_v19 }
 0x35f   : > { %3010 = vmatmul.mubr.bf16.vlgmr.msra.gmra.mrb[8].mxu1 %v1430_v7 }
 0x360   : > { %3014 = vmatpush3.bf16.msra.mxu1 %v1433_v19 }
 0x361   : > { %3015 = vmatprep.subr.bf16.mxu1 %v1434_v32 }
 0x364   : > { %3016 = vmatpush3.bf16.msra.mxu1 %v1434_v32 }
 0x367   : > { %v1410_v36 = vpop.f32.mrb[8].mxu0 }
 0x368   : > { %v1412_v38 = vpop.f32.mrb[9].mxu0  ;;  %v1411_v40 = vadd.f32 %v1410_v36, %v1019_v35 }
 0x369   : > { %v1414_v39 = vpop.f32.mrb[10].mxu0  ;;  %v1413_v47 = vadd.f32 %v1412_v38, %v1023_v37 }
 0x36a   : > { %v1415_v41 = vadd.f32 %v1414_v39, %v1019_v35  ;;  %v1416_v46 = vpop.f32.mrb[11].mxu0 }
 0x36b   : > { %v1417_v48 = vadd.f32 %v1416_v46, %v1023_v37 }
 0x36c   : > { %v1596_v49 = vpack.c.bf16 %v1415_v41, %v1411_v40 }
 0x36d   : > { %v1598_v50 = vpack.c.bf16 %v1417_v48, %v1413_v47 }
 0x36e   : > { %3021 = vmatprep.subr.bf16.mxu0 %v1596_v49 }
 0x36f   : > { %v1420_v51 = vpop.f32.mrb[12].mxu0  ;;  %3022 = vmatpush3.bf16.xpose.msra.mxu0 %v1596_v49 }
 0x370   : > { %v1422_v53 = vpop.f32.mrb[13].mxu0  ;;  %v1421_v55 = vadd.f32 %v1420_v51, %v1019_v35 }
 0x371   : > { %v1424_v54 = vpop.f32.mrb[14].mxu0  ;;  %v1423_v58 = vadd.f32 %v1422_v53, %v1023_v37 }
 0x372   : > { %v1425_v56 = vadd.f32 %v1424_v54, %v1019_v35  ;;  %v1426_v57 = vpop.f32.mrb[15].mxu0 }
 0x373   : > { %v1427_v59 = vadd.f32 %v1426_v57, %v1023_v37 }
 0x374   : > { %v1597_v44 = vpack.c.bf16 %v1425_v56, %v1421_v55 }
 0x375   : > { %v1599_v60 = vpack.c.bf16 %v1427_v59, %v1423_v58 }
 0x376   : > { %3023 = vmatprep.subr.bf16.mxu0 %v1597_v44 }
 0x377   : > { %3024 = vmatpush3.bf16.xpose.msra.mxu0 %v1597_v44 }
 0x378   : > { %3029 = vmatprep.subr.bf16.mxu0 %v1598_v50 }
 0x37e   : > { %3026 = vmatmul.mubr.bf16.vlgmr.msra.gmra.mrb[16].mxu0 %v1595_v34 }
 0x37f   : > { %3030 = vmatpush3.bf16.msra.mxu0 %v1598_v50 }
 0x380   : > { %3031 = vmatprep.subr.bf16.mxu0 %v1599_v60 }
 0x383   : > { %3032 = vmatpush3.bf16.msra.mxu0 %v1599_v60 }
 0x432   : > { %v3011_v61 = vpop.f32.mrb[8].mxu1 }
 0x433   : > { %v1469_v62 = vpop.f32.mrb[9].mxu1  ;;  %v1486_v30 = vmul.f32 0.125, %v3011_v61 }
 0x434   : > { %v1484_v0 = vmul.f32 0.125, %v1469_v62  ;;  %v3012_v1 = vpop.f32.mrb[10].mxu1 }
 0x435   : > { %v1472_v2 = vpop.f32.mrb[11].mxu1  ;;  %v1487_v17 = vmul.f32 0.125, %v3012_v1  ;;  %v1490_v35 = vadd.f32 %v1486_v30, %v946_v16 }
 0x436   : > { %v1485_v4 = vmul.f32 0.125, %v1472_v2  ;;  %v1488_v5 = vadd.f32 %v1484_v0, %v944_v63 }
 0x437   : > { %v1491_v29 = vadd.f32 %v1487_v17, %v947_v23  ;;  %v1499_v36 = vsel %vm1492_vm0, %v1490_v35, -inf }
 0x438   : > { %v1493_v6 = vsel %vm1492_vm0, %v1488_v5, -inf  ;;  %v1489_v7 = vadd.f32 %v1485_v4, %v945_v3 }
 0x439   : > { %1494 = vmax.xlane.f32.xlu1 %v1493_v6  ;;  %v1502_v33 = vsel %vm1492_vm0, %v1491_v29, -inf }
 0x43a   : > { %v1496_v8 = vsel %vm1492_vm0, %v1489_v7, -inf }
 0x43d   : > { %1497 = vmax.xlane.f32.xlu1 %v1496_v8 }
 0x451   : > { %v3027_v9 = vpop.f32.mrb[16].mxu0 }
 0x452   : > { %v1651_v10 = vmul.f32 0.125, %v3027_v9  ;;  %v1634_v11 = vpop.f32.mrb[17].mxu0 }
 0x453   : > { %v1649_v14 = vmul.f32 0.125, %v1634_v11  ;;  %v3028_v15 = vpop.f32.mrb[18].mxu0 }
 0x454   : > { %v1652_v18 = vmul.f32 0.125, %v3028_v15  ;;  %v1637_v19 = vpop.f32.mrb[19].mxu0  ;;  %v1655_v20 = vadd.f32 %v1651_v10, %v946_v16 }
 0x455   : > { %v1650_v24 = vmul.f32 0.125, %v1637_v19  ;;  %v1653_v27 = vadd.f32 %v1649_v14, %v944_v63  ;;  %v3229_v19 = vld [vmem:[%s4067_s0 + $0x40] sm:$0xff]  }
 0x456   : > { %v1663_v25 = vsel %vm1492_vm0, %v1655_v20, -inf  ;;  %v1656_v26 = vadd.f32 %v1652_v18, %v947_v23  ;;  %2949 = vmatprep.subr.bf16.mxu1 %v3229_v19 }
 0x457   : > { %1664 = vmax.xlane.f32.xlu0 %v1663_v25  ;;  %v1657_v31 = vsel %vm1492_vm0, %v1653_v27, -inf  ;;  %v1654_v32 = vadd.f32 %v1650_v24, %v945_v3 }
 0x458   : > { %v1666_v28 = vsel %vm1492_vm0, %v1656_v26, -inf }
 0x459   : > { %1667 = vmax.xlane.f32.xlu1 %v1666_v28  ;;  %v1660_v34 = vsel %vm1492_vm0, %v1654_v32, -inf }
 0x45b   : > { %1658 = vmax.xlane.f32.xlu0 %v1657_v31 }
 0x45d   : > { %1503 = vmax.xlane.f32.xlu1 %v1502_v33 }
 0x45f   : > { %1661 = vmax.xlane.f32.xlu0 %v1660_v34 }
 0x463   : > { %1500 = vmax.xlane.f32.xlu0 %v1499_v36 }
 0x4c6   : > { %v1495_v37 = vpop.xlane.xlu1 %1494 }
 0x4c7   : > { %v1505_v38 = vsub.f32 %v1488_v5, %v1495_v37 }
 0x4c9   : > { %v1509_v39 = vmul.f32 1.442695, %v1505_v38 }
 0x4ca   : > { %v1498_v40 = vpop.xlane.xlu1 %1497 }
 0x4cb   : > { %3285 = vpow2.f32 %v1509_v39  ;;  %v1506_v41 = vsub.f32 %v1489_v7, %v1498_v40 }
 0x4cd   : > { %v1511_v46 = vmul.f32 1.442695, %v1506_v41 }
 0x4cf   : > { %3287 = vpow2.f32 %v1511_v46 }
 0x4d5   : > { %v3286_v47 = vpop.eup %3285 }
 0x4d6   : > { %v1517_v48 = vsel %vm1492_vm0, %v3286_v47, 0.0 }
 0x4d7   : > { %1518 = vadd.xlane.f32.xlu0 %v1517_v48 }
 0x4d9   : > { %v3288_v49 = vpop.eup %3287 }
 0x4da   : > { %v1520_v50 = vsel %vm1492_vm0, %v3288_v49, 0.0 }
 0x4db   : > { %1521 = vadd.xlane.f32.xlu1 %v1520_v50 }
 0x4e4   : > { %v1665_v51 = vpop.xlane.xlu0 %1664 }
 0x4e5   : > { %v1671_v53 = vsub.f32 %v1655_v20, %v1665_v51 }
 0x4e6   : > { %v1668_v54 = vpop.xlane.xlu1 %1667 }
 0x4e7   : > { %v1677_v55 = vmul.f32 1.442695, %v1671_v53  ;;  %v1672_v56 = vsub.f32 %v1656_v26, %v1668_v54  ;;  %v3230_v54 = vld [vmem:[%s4067_s0] sm:$0xff]  }
 0x4e8   : > { %v1659_v57 = vpop.xlane.xlu0 %1658 }
 0x4e9   : > { %3289 = vpow2.f32 %v1677_v55  ;;  %v1679_v58 = vmul.f32 1.442695, %v1672_v56  ;;  %v1669_v59 = vsub.f32 %v1653_v27, %v1659_v57  ;;  %v3231_v56 = vld [vmem:[%s4067_s0 + $0x48] sm:$0xff]  }
 0x4ea   : > { %v1504_v44 = vpop.xlane.xlu1 %1503  ;;  %v3232_v57 = vld [vmem:[%s4067_s0 + $0x8] sm:$0xff]  }
 0x4eb   : > { %3291 = vpow2.f32 %v1679_v58  ;;  %v1673_v60 = vmul.f32 1.442695, %v1669_v59  ;;  %v1508_v61 = vsub.f32 %v1491_v29, %v1504_v44  ;;  %v3233_v58 = vld [vmem:[%s4067_s0 + $0x50] sm:$0xff]   ;;  %v3235_v44 = vld [vmem:[%s4067_s0 + $0x58] sm:$0xff]  }
 0x4ec   : > { %v1662_v62 = vpop.xlane.xlu0 %1661  ;;  %v3234_v59 = vld [vmem:[%s4067_s0 + $0x10] sm:$0xff]  }
 0x4ed   : > { %3293 = vpow2.f32 %v1673_v60  ;;  %v1670_v63 = vsub.f32 %v1654_v32, %v1662_v62  ;;  %v1515_v0 = vmul.f32 1.442695, %v1508_v61  ;;  %v3236_v60 = vld [vmem:[%s4067_s0 + $0x18] sm:$0xff]   ;;  %v3237_v61 = vld [vmem:[%s4067_s0 + $0x60] sm:$0xff]  }
 0x4ee   : > { %v3238_v62 = vld [vmem:[%s4067_s0 + $0x20] sm:$0xff]  }
 0x4ef   : > { %v1675_v1 = vmul.f32 1.442695, %v1670_v63  ;;  %v3239_v63 = vld [vmem:[%s4067_s0 + $0x68] sm:$0xff]  }
 0x4f0   : > { %v1501_v2 = vpop.xlane.xlu0 %1500 }
 0x4f1   : > { %3295 = vpow2.f32 %v1675_v1  ;;  %v1507_v3 = vsub.f32 %v1490_v35, %v1501_v2  ;;  %v3241_v1 = vld [vmem:[%s4067_s0 + $0x70] sm:$0xff]  }
 0x4f2   : > { %3297 = vpow2.f32 %v1515_v0  ;;  %v3240_v0 = vld [vmem:[%s4067_s0 + $0x28] sm:$0xff]   ;;  %v3242_v2 = vld [vmem:[%s4067_s0 + $0x30] sm:$0xff]  }
 0x4f3   : > { %v3290_v4 = vpop.eup %3289  ;;  %v1513_v5 = vmul.f32 1.442695, %v1507_v3  ;;  %v3243_v3 = vld [vmem:[%s4067_s0 + $0x78] sm:$0xff]  }
 0x4f4   : > { %v1687_v6 = vsel %vm1492_vm0, %v3290_v4, 0.0 }
 0x4f5   : > { %v3292_v7 = vpop.eup %3291  ;;  %3299 = vpow2.f32 %v1513_v5  ;;  %1688 = vadd.xlane.f32.xlu0 %v1687_v6 }
 0x4f6   : > { %v1690_v8 = vsel %vm1492_vm0, %v3292_v7, 0.0 }
 0x4f7   : > { %v3294_v9 = vpop.eup %3293  ;;  %1691 = vadd.xlane.f32.xlu1 %v1690_v8 }
 0x4f8   : > { %v1681_v10 = vsel %vm1492_vm0, %v3294_v9, 0.0 }
 0x4f9   : > { %1682 = vadd.xlane.f32.xlu0 %v1681_v10 }
 0x4fb   : > { %v3296_v11 = vpop.eup %3295 }
 0x4fc   : > { %v1684_v14 = vsel %vm1492_vm0, %v3296_v11, 0.0  ;;  %v3298_v15 = vpop.eup %3297 }
 0x4fd   : > { %1685 = vadd.xlane.f32.xlu1 %v1684_v14  ;;  %v1526_v18 = vsel %vm1492_vm0, %v3298_v15, 0.0 }
 0x4ff   : > { %v3300_v16 = vpop.eup %3299 }
 0x500   : > { %v1523_v17 = vsel %vm1492_vm0, %v3300_v16, 0.0 }
 0x501   : > { %1524 = vadd.xlane.f32.xlu0 %v1523_v17  ;;  %1527 = vadd.xlane.f32.xlu1 %v1526_v18 }
 0x564   : > { %v1519_v20 = vpop.xlane.xlu0 %1518 }
 0x565   : > { %3301 = vrcp.f32 %v1519_v20  ;;  %v2871_v20 = vld [vmem:[%s848_s4] ss:$0 sm:$0xff]  ;;  %s4510_s4 = scalar_lea.vmem [#allocation8], %s4049_s5 }
 0x568   : > { %v1522_v23 = vpop.xlane.xlu1 %1521 }
 0x569   : > { %3303 = vrcp.f32 %v1522_v23 }
 0x56f   : > { %v3302_v24 = vpop.eup %3301 }
 0x570   : > { %v1533_v26 = vmul.f32 %v3302_v24, %v3286_v47 }
 0x573   : > { %v3304_v25 = vpop.eup %3303 }
 0x574   : > { %v1534_v27 = vmul.f32 %v3304_v25, %v3288_v49 }
 0x576   : > { %v1537_v28 = vpack.c.bf16 %v1534_v27, %v1533_v26 }
 0x578   : > { %3017 = vmatprep.mubr.msk.bf16.mxu1 %vm1492_vm0, %v1537_v28 }
 0x582   : > { %v1689_v29 = vpop.xlane.xlu0 %1688 }
 0x584   : > { %v1692_v30 = vpop.xlane.xlu1 %1691 }
 0x585   : > { %3305 = vrcp.f32 %v1692_v30 }
 0x586   : > { %v1683_v31 = vpop.xlane.xlu0 %1682 }
 0x587   : > { %3307 = vrcp.f32 %v1683_v31 }
 0x588   : > { %3309 = vrcp.f32 %v1689_v29 }
 0x58a   : > { %v1686_v32 = vpop.xlane.xlu1 %1685 }
 0x58b   : > { %3311 = vrcp.f32 %v1686_v32 }
 0x58e   : > { %v1525_v33 = vpop.xlane.xlu0 %1524  ;;  %v1528_v34 = vpop.xlane.xlu1 %1527 }
 0x58f   : > { %3313 = vrcp.f32 %v1525_v33  ;;  %v3306_v35 = vpop.eup %3305 }
 0x590   : > { %3315 = vrcp.f32 %v1528_v34  ;;  %v1700_v39 = vmul.f32 %v3306_v35, %v3292_v7 }
 0x591   : > { %v3308_v36 = vpop.eup %3307 }
 0x592   : > { %v3310_v37 = vpop.eup %3309  ;;  %v1697_v40 = vmul.f32 %v3308_v36, %v3294_v9 }
 0x593   : > { %v1699_v46 = vmul.f32 %v3310_v37, %v3290_v4  ;;  %v3244_v4 = vld [vmem:[%s4067_s0 + $0x38] sm:$0xff]  }
 0x595   : > { %v3312_v38 = vpop.eup %3311  ;;  %v1702_v49 = vpack.c.bf16 %v1700_v39, %v1699_v46  ;;  %v3247_v46 = vld [vmem:[%s4097_s18 + $0x4] ss:$8 sps:$4 sm:$0xff]  }
 0x596   : > { %v1698_v41 = vmul.f32 %v3312_v38, %v3296_v11  ;;  %2127 = vmatprep.subr.bf16.mxu0 %v3247_v46 }
 0x598   : > { %v1701_v47 = vpack.c.bf16 %v1698_v41, %v1697_v40  ;;  %v3245_v41 = vld [vmem:[%s4097_s18] ss:$8 sps:$4 sm:$0xff]  }
 0x599   : > { %v3314_v48 = vpop.eup %3313 }
 0x59a   : > { %v3316_v50 = vpop.eup %3315  ;;  %v1535_v51 = vmul.f32 %v3314_v48, %v3300_v16  ;;  %3033 = vmatprep.mubr.msk.bf16.mxu0 %vm1492_vm0, %v1701_v47  ;;  %v3250_v47 = vld [vmem:[%s4097_s18 + $0x14] ss:$8 sps:$4 sm:$0xff]  }
 0x59b   : > { %v1536_v53 = vmul.f32 %v3316_v50, %v3298_v15  ;;  %3034 = vmatmul.mubr.msk.bf16.vlgmr.msra.gmra.mrb[20].mxu0 %vm1492_vm0, %v1702_v49 }
 0x59c   : > { %2159 = vmatprep.mubr.bf16.mxu0 %v3656_v52  ;;  %2128 = vmatpush1.bf16.msra.mxu0 %v3245_v41 }
 0x59d   : > { %v1538_v55 = vpack.c.bf16 %v1536_v53, %v1535_v51  ;;  %2129 = vmatprep.subr.bf16.mxu0 %v3250_v47 }
 0x59f   : > { %3018 = vmatmul.mubr.msk.bf16.vlgmr.msra.gmra.mrb[12].mxu1 %vm1492_vm0, %v1538_v55 }
 0x5a0   : > { %2950 = vmatpush3.bf16.msra.mxu1 %v3230_v54 }
 0x5a1   : > { %2951 = vmatprep.subr.bf16.mxu1 %v3231_v56 }
 0x5a4   : > { %2952 = vmatpush3.bf16.msra.mxu1 %v3232_v57 }
 0x5a5   : > { %2953 = vmatprep.subr.bf16.mxu1 %v3233_v58 }
 0x5a8   : > { %2954 = vmatpush3.bf16.msra.mxu1 %v3234_v59 }
 0x5a9   : > { %2955 = vmatprep.subr.bf16.mxu1 %v3235_v44 }
 0x5ac   : > { %2956 = vmatpush3.bf16.msra.mxu1 %v3236_v60 }
 0x5ad   : > { %2957 = vmatprep.subr.bf16.mxu1 %v3237_v61 }
 0x5b0   : > { %2958 = vmatpush3.bf16.msra.mxu1 %v3238_v62  ;;  %v3253_v62 = vld [vmem:[%s4097_s18 + $0x24] ss:$8 sps:$4 sm:$0xff]  }
 0x5b1   : > { %2959 = vmatprep.subr.bf16.mxu1 %v3239_v63  ;;  %v3251_v63 = vld [vmem:[%s4097_s18 + $0x20] ss:$8 sps:$4 sm:$0xff]  }
 0x5b4   : > { %2960 = vmatpush3.bf16.msra.mxu1 %v3240_v0  ;;  %v3256_v0 = vld [vmem:[%s4097_s18 + $0x34] ss:$8 sps:$4 sm:$0xff]  }
 0x5b5   : > { %2961 = vmatprep.subr.bf16.mxu1 %v3241_v1  ;;  %v3254_v1 = vld [vmem:[%s4097_s18 + $0x30] ss:$8 sps:$4 sm:$0xff]  }
 0x5b8   : > { %2962 = vmatpush3.bf16.msra.mxu1 %v3242_v2  ;;  %v3259_v2 = vld [vmem:[%s4097_s18 + $0x44] ss:$8 sps:$4 sm:$0xff]  }
 0x5b9   : > { %2963 = vmatprep.subr.bf16.mxu1 %v3243_v3  ;;  %v3257_v3 = vld [vmem:[%s4097_s18 + $0x40] ss:$8 sps:$4 sm:$0xff]  }
 0x5bc   : > { %2964 = vmatpush3.bf16.msra.mxu1 %v3244_v4  ;;  %v3262_v4 = vld [vmem:[%s4097_s18 + $0x54] ss:$8 sps:$4 sm:$0xff]  }
 0x66e   : > { %v3035_v5 = vpop.f32.mrb[20].mxu0 }
 0x66f   : > { %v1743_v6 = vpop.f32.mrb[21].mxu0 }
 0x670   : > { %v3036_v7 = vpop.f32.mrb[22].mxu0 }
 0x671   : > { %v1793_v8 = vpack.c.bf16 %v3036_v7, %v3035_v5  ;;  %v1746_v9 = vpop.f32.mrb[23].mxu0  ;;  %v3260_v5 = vld [vmem:[%s4097_s18 + $0x50] ss:$8 sps:$4 sm:$0xff]   ;;  %v3263_v7 = vld [vmem:[%s4097_s18 + $0x60] ss:$8 sps:$4 sm:$0xff]  }
 0x672   : > { %v3019_v10 = vpop.f32.mrb[12].mxu1  ;;  %v1791_v11 = vpack.c.bf16 %v1746_v9, %v1743_v6  ;;  %v3265_v6 = vld [vmem:[%s4097_s18 + $0x64] ss:$8 sps:$4 sm:$0xff]   ;;  %v3266_v9 = vld [vmem:[%s4097_s18 + $0x70] ss:$8 sps:$4 sm:$0xff]  }
 0x673   : > { %v1579_v14 = vpop.f32.mrb[13].mxu1 }
 0x674   : > { %v3020_v15 = vpop.f32.mrb[14].mxu1  ;;  %1929 = vmatprep.mubr.bf16.mxu1 %v1791_v11 }
 0x675   : > { %v1792_v16 = vpack.c.bf16 %v3020_v15, %v3019_v10  ;;  %v1582_v17 = vpop.f32.mrb[15].mxu1 }
 0x676   : > { %v1790_v18 = vpack.c.bf16 %v1582_v17, %v1579_v14 }
 0x678   : > { %1930 = vmatmul.mubr.bf16.vlgmr.msra.gmra.mrb[16].mxu1 %v1790_v18 }
 0x679   : > { %1937 = vmatprep.mubr.bf16.mxu1 %v1793_v8  ;;  %v3268_v8 = vld [vmem:[%s4097_s18 + $0x74] ss:$8 sps:$4 sm:$0xff]  }
 0x680   : > { %1938 = vmatmul.mubr.bf16.gmra.mrb[20].mxu1 %v1792_v16 }
 0x74b   : > { %v2965_v19 = vpop.f32.mrb[16].mxu1 }
 0x74c   : > { %v2966_v23 = vpop.f32.mrb[17].mxu1 }
 0x74d   : > { %v2967_v24 = vadd.f32 %v2966_v23, %v2965_v19  ;;  %v2968_v25 = vpop.f32.mrb[18].mxu1 }
 0x74e   : > { %v2969_v26 = vpop.f32.mrb[19].mxu1 }
 0x74f   : > { %v1932_v27 = vadd.f32 %v2967_v24, %v2871_v20  ;;  %v2970_v28 = vadd.f32 %v2969_v26, %v2968_v25 }
 0x751   : > { %v1935_v29 = vadd.f32 %v2970_v28, %v2871_v20  ;;  %v1946_v30 = vadd.f32 %v1932_v27, %v4143_v12  ;;  %v2888_v27 = vld [vmem:[%s4510_s4] ss:$0 sm:$0xff] }
 0x753   : > { %v2971_v31 = vpop.f32.mrb[20].mxu1  ;;  %1952 = vadd.xlane.f32.xlu0 %v1946_v30  ;;  %v1947_v32 = vadd.f32 %v1935_v29, %v4145_v13  ;;  %v3248_v13 = vld [vmem:[%s4097_s18 + $0x10] ss:$8 sps:$4 sm:$0xff]  }
 0x754   : > { %v2972_v33 = vpop.f32.mrb[21].mxu1  ;;  %2130 = vmatpush1.bf16.msra.mxu0 %v3248_v13 }
 0x755   : > { %v2973_v34 = vadd.f32 %v2972_v33, %v2971_v31  ;;  %v2974_v35 = vpop.f32.mrb[22].mxu1  ;;  %1954 = vadd.xlane.f32.xlu1 %v1947_v32  ;;  %2131 = vmatprep.subr.bf16.mxu0 %v3253_v62 }
 0x756   : > { %v2975_v36 = vpop.f32.mrb[23].mxu1 }
 0x757   : > { %v1940_v37 = vadd.f32 %v2973_v34, %v2871_v20  ;;  %v2976_v38 = vadd.f32 %v2975_v36, %v2974_v35 }
 0x758   : > { %2132 = vmatpush1.bf16.msra.mxu0 %v3251_v63 }
 0x759   : > { %v1943_v39 = vadd.f32 %v2976_v38, %v2871_v20  ;;  %v1948_v40 = vadd.f32 %v1940_v37, %v4155_v21  ;;  %2133 = vmatprep.subr.bf16.mxu0 %v3256_v0 }
 0x75b   : > { %1956 = vadd.xlane.f32.xlu0 %v1948_v40  ;;  %v1949_v12 = vadd.f32 %v1943_v39, %v4157_v22 }
 0x75c   : > { %2134 = vmatpush1.bf16.msra.mxu0 %v3254_v1 }
 0x75d   : > { %1958 = vadd.xlane.f32.xlu1 %v1949_v12  ;;  %2135 = vmatprep.subr.bf16.mxu0 %v3259_v2 }
 0x760   : > { %2136 = vmatpush1.bf16.msra.mxu0 %v3257_v3 }
 0x761   : > { %2137 = vmatprep.subr.bf16.mxu0 %v3262_v4 }
 0x764   : > { %2138 = vmatpush1.bf16.msra.mxu0 %v3260_v5 }
 0x765   : > { %2139 = vmatprep.subr.bf16.mxu0 %v3265_v6 }
 0x768   : > { %2140 = vmatpush1.bf16.msra.mxu0 %v3263_v7 }
 0x769   : > { %2141 = vmatprep.subr.bf16.mxu0 %v3268_v8 }
 0x76c   : > { %2142 = vmatpush1.bf16.msra.mxu0 %v3266_v9 }
 0x7e0   : > { %v1953_v48 = vpop.xlane.xlu0 %1952 }
 0x7e1   : > { %v1961_v49 = vmul.f32 0.0078125, %v1953_v48  ;;  %v3269_v48 = vld [vmem:[%s4099_s13 + $0x40] sm:$0xff]  }
 0x7e2   : > { %v1955_v50 = vpop.xlane.xlu1 %1954  ;;  %2977 = vmatprep.subr.bf16.mxu1 %v3269_v48 }
 0x7e3   : > { %v1965_v51 = vsub.f32 %v1946_v30, %v1961_v49  ;;  %v1962_v53 = vmul.f32 0.0078125, %v1955_v50  ;;  %v3270_v49 = vld [vmem:[%s4099_s13] sm:$0xff]   ;;  %v3271_v50 = vld [vmem:[%s4099_s13 + $0x48] sm:$0xff]  }
 0x7e4   : > { %2978 = vmatpush3.bf16.msra.mxu1 %v3270_v49 }
 0x7e5   : > { %v1966_v54 = vsub.f32 %v1947_v32, %v1962_v53  ;;  %v1969_v21 = vmul.f32 %v1965_v51, %v1965_v51  ;;  %v2889_v32 = vld [vmem:[%s851_s16] ss:$0 sm:$0xff]  ;;  %2979 = vmatprep.subr.bf16.mxu1 %v3271_v50  ;;  %v3274_v53 = vld [vmem:[%s4099_s13 + $0x10] sm:$0xff]  }
 0x7e7   : > { %1973 = vadd.xlane.f32.xlu0 %v1969_v21  ;;  %v1970_v22 = vmul.f32 %v1966_v54, %v1966_v54  ;;  %v3276_v21 = vld [vmem:[%s4099_s13 + $0x18] sm:$0xff]  }
 0x7e8   : > { %v1957_v55 = vpop.xlane.xlu0 %1956 }
 0x7e9   : > { %v1963_v56 = vmul.f32 0.0078125, %v1957_v55  ;;  %1975 = vadd.xlane.f32.xlu1 %v1970_v22  ;;  %v3277_v22 = vld [vmem:[%s4099_s13 + $0x60] sm:$0xff]  }
 0x7ea   : > { %v1959_v57 = vpop.xlane.xlu1 %1958  ;;  %v3278_v55 = vld [vmem:[%s4099_s13 + $0x20] sm:$0xff]  }
 0x7eb   : > { %v1967_v58 = vsub.f32 %v1948_v40, %v1963_v56  ;;  %v1964_v59 = vmul.f32 0.0078125, %v1959_v57  ;;  %v3279_v56 = vld [vmem:[%s4099_s13 + $0x68] sm:$0xff]  }
 0x7ec   : > { %v3280_v57 = vld [vmem:[%s4099_s13 + $0x28] sm:$0xff]  }
 0x7ed   : > { %v1968_v44 = vsub.f32 %v1949_v12, %v1964_v59  ;;  %v1971_v60 = vmul.f32 %v1967_v58, %v1967_v58  ;;  %v3282_v59 = vld [vmem:[%s4099_s13 + $0x30] sm:$0xff]  }
 0x7ef   : > { %1977 = vadd.xlane.f32.xlu0 %v1971_v60  ;;  %v1972_v61 = vmul.f32 %v1968_v44, %v1968_v44  ;;  %v3284_v60 = vld [vmem:[%s4099_s13 + $0x38] sm:$0xff]  }
 0x7f1   : > { %1979 = vadd.xlane.f32.xlu1 %v1972_v61  ;;  %v2035_v61 = vld [vmem:[%s4095_s28] sm:$0x3] }
 0x7f2   : > { %v2040_v62 = vrot.slane %v2035_v61, %v1002_v43  ;;  %v2044_v63 = vrot.slane %v2035_v61, %v1006_v45 }
 0x874   : > { %v1974_v10 = vpop.xlane.xlu0 %1973 }
 0x875   : > { %v1981_v11 = vmul.f32 0.0078125, %v1974_v10 }
 0x876   : > { %v1976_v14 = vpop.xlane.xlu1 %1975 }
 0x877   : > { %v1985_v15 = vadd.f32 1e-05, %v1981_v11  ;;  %v1982_v16 = vmul.f32 0.0078125, %v1976_v14 }
 0x879   : > { %3317 = vrsqrt.f32 %v1985_v15  ;;  %v1986_v17 = vadd.f32 1e-05, %v1982_v16 }
 0x87b   : > { %3319 = vrsqrt.f32 %v1986_v17 }
 0x87c   : > { %v1978_v18 = vpop.xlane.xlu0 %1977 }
 0x87d   : > { %v1983_v19 = vmul.f32 0.0078125, %v1978_v18 }
 0x87e   : > { %v1980_v20 = vpop.xlane.xlu1 %1979 }
 0x87f   : > { %v1987_v23 = vadd.f32 1e-05, %v1983_v19  ;;  %v1984_v24 = vmul.f32 0.0078125, %v1980_v20 }
 0x881   : > { %3321 = vrsqrt.f32 %v1987_v23  ;;  %v1988_v25 = vadd.f32 1e-05, %v1984_v24 }
 0x883   : > { %v3318_v26 = vpop.eup %3317  ;;  %3323 = vrsqrt.f32 %v1988_v25 }
 0x884   : > { %v1993_v28 = vmul.f32 %v3318_v26, %v1965_v51  ;;  %v3273_v51 = vld [vmem:[%s4099_s13 + $0x50] sm:$0xff]  }
 0x885   : > { %v3320_v29 = vpop.eup %3319 }
 0x886   : > { %v1994_v30 = vmul.f32 %v3320_v29, %v1966_v54  ;;  %v2003_v31 = vmul.f32 %v2888_v27, %v1993_v28  ;;  %v3275_v54 = vld [vmem:[%s4099_s13 + $0x58] sm:$0xff]  }
 0x888   : > { %v2004_v33 = vmul.f32 %v2888_v27, %v1994_v30  ;;  %v4284_v34 = vadd.f32 %v2889_v32, %v2003_v31 }
 0x88a   : > { %v4286_v35 = vadd.f32 %v2889_v32, %v2004_v33 }
 0x88b   : > { %v3322_v36 = vpop.eup %3321 }
 0x88c   : > { %v2033_v37 = vpack.c.bf16 %v4286_v35, %v4284_v34  ;;  %v1995_v38 = vmul.f32 %v3322_v36, %v1967_v58  ;;  %v3281_v58 = vld [vmem:[%s4099_s13 + $0x70] sm:$0xff]  }
 0x88d   : > { %v3324_v39 = vpop.eup %3323 }
 0x88e   : > { %2160 = vmatmul.mubr.bf16.vlgmr.msra.gmra.mrb[24].mxu0 %v2033_v37  ;;  %v1996_v40 = vmul.f32 %v3324_v39, %v1968_v44  ;;  %v2005_v12 = vmul.f32 %v2888_v27, %v1995_v38  ;;  %v3283_v44 = vld [vmem:[%s4099_s13 + $0x78] sm:$0xff]  }
 0x88f   : > { %2169 = vmatprep.mubr.bf16.mxu0 %v3656_v52  ;;  %v3272_v52 = vld [vmem:[%s4099_s13 + $0x8] sm:$0xff]  }
 0x890   : > { %v2006_v41 = vmul.f32 %v2888_v27, %v1996_v40  ;;  %v4291_v46 = vadd.f32 %v2889_v32, %v2005_v12  ;;  %2980 = vmatpush3.bf16.msra.mxu1 %v3272_v52 }
 0x891   : > { %2981 = vmatprep.subr.bf16.mxu1 %v3273_v51 }
 0x892   : > { %v4293_v47 = vadd.f32 %v2889_v32, %v2006_v41 }
 0x894   : > { %v2034_v13 = vpack.c.bf16 %v4293_v47, %v4291_v46  ;;  %2982 = vmatpush3.bf16.msra.mxu1 %v3274_v53 }
 0x895   : > { %2983 = vmatprep.subr.bf16.mxu1 %v3275_v54 }
 0x896   : > { %2170 = vmatmul.mubr.bf16.gmra.mrb[28].mxu0 %v2034_v13 }
 0x898   : > { %2984 = vmatpush3.bf16.msra.mxu1 %v3276_v21 }
 0x899   : > { %2985 = vmatprep.subr.bf16.mxu1 %v3277_v22 }
 0x89c   : > { %2986 = vmatpush3.bf16.msra.mxu1 %v3278_v55 }
 0x89d   : > { %2987 = vmatprep.subr.bf16.mxu1 %v3279_v56 }
 0x8a0   : > { %2988 = vmatpush3.bf16.msra.mxu1 %v3280_v57 }
 0x8a1   : > { %2989 = vmatprep.subr.bf16.mxu1 %v3281_v58 }
 0x8a4   : > { %2990 = vmatpush3.bf16.msra.mxu1 %v3282_v59 }
 0x8a5   : > { %2991 = vmatprep.subr.bf16.mxu1 %v3283_v44 }
 0x8a8   : > { %2992 = vmatpush3.bf16.msra.mxu1 %v3284_v60 }
 0x961   : > { %v2161_v0 = vpop.f32.mrb[24].mxu0 }
 0x962   : > { %v4318_v1 = vadd.f32 %v2161_v0, %v2040_v62  ;;  %v2163_v2 = vpop.f32.mrb[25].mxu0 }
 0x963   : > { %v4320_v3 = vadd.f32 %v2163_v2, %v2044_v63  ;;  %v2165_v4 = vpop.f32.mrb[26].mxu0 }
 0x964   : > { %v2188_v5 = vmul.f32 0.044715, %v4318_v1  ;;  %v4323_v6 = vadd.f32 %v2165_v4, %v2040_v62  ;;  %v2167_v7 = vpop.f32.mrb[27].mxu0  ;;  %v2180_v4 = vmul.f32 0.5, %v4318_v1 }
 0x965   : > { %v2189_v8 = vmul.f32 0.044715, %v4320_v3  ;;  %v4326_v9 = vadd.f32 %v2167_v7, %v2044_v63 }
 0x966   : > { %v2196_v43 = vmul.f32 %v2188_v5, %v4318_v1  ;;  %v2190_v42 = vmul.f32 0.044715, %v4323_v6  ;;  %v2182_v5 = vmul.f32 0.5, %v4323_v6 }
 0x967   : > { %v2197_v45 = vmul.f32 %v2189_v8, %v4320_v3  ;;  %v2191_v10 = vmul.f32 0.044715, %v4326_v9  ;;  %v2181_v8 = vmul.f32 0.5, %v4320_v3 }
 0x968   : > { %v2204_v11 = vmul.f32 %v2196_v43, %v4318_v1  ;;  %v2198_v14 = vmul.f32 %v2190_v42, %v4323_v6  ;;  %v2183_v43 = vmul.f32 0.5, %v4326_v9 }
 0x969   : > { %v2205_v15 = vmul.f32 %v2197_v45, %v4320_v3  ;;  %v2199_v16 = vmul.f32 %v2191_v10, %v4326_v9  ;;  %v2171_v17 = vpop.f32.mrb[28].mxu0 }
 0x96a   : > { %v2212_v18 = vadd.f32 %v2204_v11, %v4318_v1  ;;  %v2206_v19 = vmul.f32 %v2198_v14, %v4323_v6  ;;  %v4338_v20 = vadd.f32 %v2171_v17, %v2040_v62  ;;  %v2173_v23 = vpop.f32.mrb[29].mxu0 }
 0x96b   : > { %v2207_v24 = vmul.f32 %v2199_v16, %v4326_v9  ;;  %v4341_v25 = vadd.f32 %v2173_v23, %v2044_v63  ;;  %v2175_v26 = vpop.f32.mrb[30].mxu0  ;;  %v2213_v27 = vadd.f32 %v2205_v15, %v4320_v3 }
 0x96c   : > { %v2220_v28 = vmul.f32 0.7978846, %v2212_v18  ;;  %v2214_v29 = vadd.f32 %v2206_v19, %v4323_v6  ;;  %v2192_v30 = vmul.f32 0.044715, %v4338_v20  ;;  %v2176_v31 = vadd.f32 %v2175_v26, %v2040_v62  ;;  %v2177_v32 = vpop.f32.mrb[31].mxu0 }
 0x96d   : > { %v2193_v33 = vmul.f32 0.044715, %v4341_v25  ;;  %v2178_v36 = vadd.f32 %v2177_v32, %v2044_v63  ;;  %v2215_v37 = vadd.f32 %v2207_v24, %v4326_v9  ;;  %v2221_v38 = vmul.f32 0.7978846, %v2213_v27 }
 0x96e   : > { %3325 = vtanh.f32 %v2220_v28  ;;  %v2222_v39 = vmul.f32 0.7978846, %v2214_v29  ;;  %v2200_v40 = vmul.f32 %v2192_v30, %v4338_v20  ;;  %v2194_v12 = vmul.f32 0.044715, %v2176_v31 }
 0x96f   : > { %v2201_v41 = vmul.f32 %v2193_v33, %v4341_v25  ;;  %v2195_v13 = vmul.f32 0.044715, %v2178_v36  ;;  %v2223_v48 = vmul.f32 0.7978846, %v2215_v37  ;;  %3327 = vtanh.f32 %v2221_v38 }
 0x970   : > { %3329 = vtanh.f32 %v2222_v39  ;;  %v2208_v49 = vmul.f32 %v2200_v40, %v4338_v20  ;;  %v2202_v50 = vmul.f32 %v2194_v12, %v2176_v31  ;;  %v2184_v3 = vmul.f32 0.5, %v4338_v20 }
 0x971   : > { %v2209_v52 = vmul.f32 %v2201_v41, %v4341_v25  ;;  %v2203_v51 = vmul.f32 %v2195_v13, %v2178_v36  ;;  %3331 = vtanh.f32 %v2223_v48  ;;  %v2186_v6 = vmul.f32 0.5, %v2176_v31 }
 0x972   : > { %v2210_v53 = vmul.f32 %v2202_v50, %v2176_v31  ;;  %v2216_v54 = vadd.f32 %v2208_v49, %v4338_v20  ;;  %v2185_v26 = vmul.f32 0.5, %v4341_v25  ;;  %v2187_v27 = vmul.f32 0.5, %v2178_v36  ;;  %v2906_v20 = vld [vmem:[%s858_s7] ss:$0 sm:$0xff] }
 0x973   : > { %v2211_v21 = vmul.f32 %v2203_v51, %v2178_v36  ;;  %v2217_v22 = vadd.f32 %v2209_v52, %v4341_v25 }
 0x974   : > { %v2218_v55 = vadd.f32 %v2210_v53, %v2176_v31  ;;  %v2224_v56 = vmul.f32 0.7978846, %v2216_v54 }
 0x975   : > { %v2219_v57 = vadd.f32 %v2211_v21, %v2178_v36  ;;  %v2225_v58 = vmul.f32 0.7978846, %v2217_v22 }
 0x976   : > { %v2226_v59 = vmul.f32 0.7978846, %v2218_v55  ;;  %3333 = vtanh.f32 %v2224_v56 }
 0x977   : > { %v2227_v44 = vmul.f32 0.7978846, %v2219_v57  ;;  %3335 = vtanh.f32 %v2225_v58 }
 0x978   : > { %v3326_v60 = vpop.eup %3325  ;;  %3337 = vtanh.f32 %v2226_v59 }
 0x979   : > { %v3328_v61 = vpop.eup %3327  ;;  %v2236_v62 = vadd.f32 1.0, %v3326_v60  ;;  %3339 = vtanh.f32 %v2227_v44 }
 0x97a   : > { %v3330_v63 = vpop.eup %3329  ;;  %v2237_v0 = vadd.f32 1.0, %v3328_v61 }
 0x97b   : > { %v3332_v2 = vpop.eup %3331  ;;  %v2238_v7 = vadd.f32 1.0, %v3330_v63  ;;  %v2244_v45 = vmul.f32 %v2236_v62, %v2180_v4 }
 0x97c   : > { %v2239_v42 = vadd.f32 1.0, %v3332_v2  ;;  %v2245_v11 = vmul.f32 %v2237_v0, %v2181_v8 }
 0x97d   : > { %v2246_v10 = vmul.f32 %v2238_v7, %v2182_v5 }
 0x97e   : > { %v2247_v14 = vmul.f32 %v2239_v42, %v2183_v43 }
 0x97f   : > { %v2284_v15 = vpack.c.bf16 %v2246_v10, %v2244_v45 }
 0x980   : > { %v3334_v16 = vpop.eup %3333  ;;  %v2285_v17 = vpack.c.bf16 %v2247_v14, %v2245_v11 }
 0x981   : > { %v3336_v18 = vpop.eup %3335  ;;  %v2240_v19 = vadd.f32 1.0, %v3334_v16 }
 0x982   : > { %v3338_v23 = vpop.eup %3337  ;;  %2423 = vmatprep.mubr.bf16.mxu1 %v2285_v17  ;;  %v2241_v1 = vadd.f32 1.0, %v3336_v18 }
 0x983   : > { %v3340_v24 = vpop.eup %3339  ;;  %2424 = vmatmul.mubr.bf16.vlgmr.msra.gmra.mrb[24].mxu1 %v2284_v15  ;;  %v2242_v9 = vadd.f32 1.0, %v3338_v23  ;;  %v2248_v29 = vmul.f32 %v2240_v19, %v2184_v3 }
 0x984   : > { %v2243_v28 = vadd.f32 1.0, %v3340_v24  ;;  %v2249_v32 = vmul.f32 %v2241_v1, %v2185_v26  ;;  %v2923_v1 = vld [vmem:[%s713_s1] ss:$0 sm:$0xff] }
 0x985   : > { %v2250_v30 = vmul.f32 %v2242_v9, %v2186_v6  ;;  %v2924_v6 = vld [vmem:[%s721_s29] ss:$0 sm:$0xff] }
 0x986   : > { %v2251_v33 = vmul.f32 %v2243_v28, %v2187_v27 }
 0x987   : > { %v2286_v37 = vpack.c.bf16 %v2250_v30, %v2248_v29 }
 0x988   : > { %v2287_v38 = vpack.c.bf16 %v2251_v33, %v2249_v32 }
 0x98a   : > { %2431 = vmatprep.mubr.bf16.mxu1 %v2287_v38 }
 0x98b   : > { %2432 = vmatmul.mubr.bf16.gmra.mrb[28].mxu1 %v2286_v37 }
 0xa56   : > { %v2993_v39 = vpop.f32.mrb[24].mxu1 }
 0xa57   : > { %v2994_v31 = vpop.f32.mrb[25].mxu1 }
 0xa58   : > { %v2995_v40 = vadd.f32 %v2994_v31, %v2993_v39  ;;  %v2996_v12 = vpop.f32.mrb[26].mxu1 }
 0xa59   : > { %v2997_v25 = vpop.f32.mrb[27].mxu1 }
 0xa5a   : > { %v2426_v36 = vadd.f32 %v2995_v40, %v2906_v20  ;;  %v2998_v41 = vadd.f32 %v2997_v25, %v2996_v12 }
 0xa5c   : > { %v2429_v13 = vadd.f32 %v2998_v41, %v2906_v20  ;;  %v2440_v48 = vadd.f32 %v2426_v36, %v4284_v34 }
 0xa5e   : > { %2446 = vadd.xlane.f32.xlu0 %v2440_v48  ;;  %v2999_v49 = vpop.f32.mrb[28].mxu1  ;;  %v2441_v50 = vadd.f32 %v2429_v13, %v4286_v35 }
 0xa5f   : > { %v3000_v52 = vpop.f32.mrb[29].mxu1 }
 0xa60   : > { %v3001_v51 = vadd.f32 %v3000_v52, %v2999_v49  ;;  %2448 = vadd.xlane.f32.xlu1 %v2441_v50  ;;  %v3002_v53 = vpop.f32.mrb[30].mxu1 }
 0xa61   : > { %v3003_v54 = vpop.f32.mrb[31].mxu1 }
 0xa62   : > { %v2434_v21 = vadd.f32 %v3001_v51, %v2906_v20  ;;  %v3004_v22 = vadd.f32 %v3003_v54, %v3002_v53 }
 0xa64   : > { %v2437_v55 = vadd.f32 %v3004_v22, %v2906_v20  ;;  %v2442_v56 = vadd.f32 %v2434_v21, %v4291_v46 }
 0xa66   : > { %2450 = vadd.xlane.f32.xlu0 %v2442_v56  ;;  %v2443_v57 = vadd.f32 %v2437_v55, %v4293_v47 }
 0xa68   : > { %2452 = vadd.xlane.f32.xlu1 %v2443_v57 }
 0xaeb   : > { %v2447_v58 = vpop.xlane.xlu0 %2446 }
 0xaec   : > { %v2454_v34 = vmul.f32 0.0078125, %v2447_v58 }
 0xaed   : > { %v2449_v59 = vpop.xlane.xlu1 %2448 }
 0xaee   : > { %v2458_v44 = vsub.f32 %v2440_v48, %v2454_v34  ;;  %v2455_v60 = vmul.f32 0.0078125, %v2449_v59 }
 0xaf0   : > { %v2459_v35 = vsub.f32 %v2441_v50, %v2455_v60  ;;  %v2462_v61 = vmul.f32 %v2458_v44, %v2458_v44 }
 0xaf2   : > { %2466 = vadd.xlane.f32.xlu0 %v2462_v61  ;;  %v2463_v62 = vmul.f32 %v2459_v35, %v2459_v35 }
 0xaf3   : > { %v2451_v63 = vpop.xlane.xlu0 %2450 }
 0xaf4   : > { %v2456_v0 = vmul.f32 0.0078125, %v2451_v63  ;;  %2468 = vadd.xlane.f32.xlu1 %v2463_v62 }
 0xaf5   : > { %v2453_v2 = vpop.xlane.xlu1 %2452 }
 0xaf6   : > { %v2460_v4 = vsub.f32 %v2442_v56, %v2456_v0  ;;  %v2457_v5 = vmul.f32 0.0078125, %v2453_v2 }
 0xaf8   : > { %v2461_v46 = vsub.f32 %v2443_v57, %v2457_v5  ;;  %v2464_v7 = vmul.f32 %v2460_v4, %v2460_v4 }
 0xafa   : > { %2470 = vadd.xlane.f32.xlu0 %v2464_v7  ;;  %v2465_v47 = vmul.f32 %v2461_v46, %v2461_v46 }
 0xafc   : > { %2472 = vadd.xlane.f32.xlu1 %v2465_v47 }
 0xb7f   : > { %v2467_v8 = vpop.xlane.xlu0 %2466 }
 0xb80   : > { %v2474_v43 = vmul.f32 0.0078125, %v2467_v8 }
 0xb81   : > { %v2469_v42 = vpop.xlane.xlu1 %2468 }
 0xb82   : > { %v2478_v45 = vadd.f32 1e-05, %v2474_v43  ;;  %v2475_v10 = vmul.f32 0.0078125, %v2469_v42 }
 0xb84   : > { %3341 = vrsqrt.f32 %v2478_v45  ;;  %v2479_v11 = vadd.f32 1e-05, %v2475_v10 }
 0xb86   : > { %3343 = vrsqrt.f32 %v2479_v11 }
 0xb87   : > { %v2471_v14 = vpop.xlane.xlu0 %2470 }
 0xb88   : > { %v2476_v15 = vmul.f32 0.0078125, %v2471_v14 }
 0xb89   : > { %v2473_v16 = vpop.xlane.xlu1 %2472 }
 0xb8a   : > { %v2480_v17 = vadd.f32 1e-05, %v2476_v15  ;;  %v2477_v18 = vmul.f32 0.0078125, %v2473_v16 }
 0xb8c   : > { %3345 = vrsqrt.f32 %v2480_v17  ;;  %v2481_v19 = vadd.f32 1e-05, %v2477_v18 }
 0xb8e   : > { %v3342_v23 = vpop.eup %3341  ;;  %3347 = vrsqrt.f32 %v2481_v19 }
 0xb8f   : > { %v2486_v24 = vmul.f32 %v3342_v23, %v2458_v44 }
 0xb90   : > { %v3344_v3 = vpop.eup %3343 }
 0xb91   : > { %v2496_v9 = vmul.f32 %v2923_v1, %v2486_v24  ;;  %v2487_v26 = vmul.f32 %v3344_v3, %v2459_v35 }
 0xb93   : > { %v2506_v27 = vadd.f32 %v2924_v6, %v2496_v9  ;;  %v2497_v28 = vmul.f32 %v2923_v1, %v2487_v26 }
 0xb95   : > { %2510 = vst [vmem:[#allocation2] sm:$0xff] %v2506_v27  ;;  %v2507_v29 = vadd.f32 %v2924_v6, %v2497_v28  ;;  %2518 = vst [vmem:[#allocation13] sm:$0xff] (!%p2925_p11), %v2506_v27 }
 0xb96   : > { %v3346_v30 = vpop.eup %3345 }
 0xb97   : > { %2511 = vst [vmem:[#allocation2 + $0x8] sm:$0xff] %v2507_v29  ;;  %v2488_v32 = vmul.f32 %v3346_v30, %v2460_v4  ;;  %2519 = vst [vmem:[#allocation13 + $0x8] sm:$0xff] (!%p2925_p11), %v2507_v29 }
 0xb98   : > { %v3348_v33 = vpop.eup %3347 }
 0xb99   : > { %v2498_v37 = vmul.f32 %v2923_v1, %v2488_v32  ;;  %v2489_v38 = vmul.f32 %v3348_v33, %v2461_v46  ;;  %2517 = sbr.rel (%p2925_p11) target bundleno = 2976 (0xba0), region = 120 }
 0xb9b   : > { %v2508_v39 = vadd.f32 %v2924_v6, %v2498_v37  ;;  %v2499_v20 = vmul.f32 %v2923_v1, %v2489_v38 }
 0xb9d   : > { %2512 = vst [vmem:[#allocation2 + $0x10] sm:$0xff] %v2508_v39  ;;  %v2509_v31 = vadd.f32 %v2924_v6, %v2499_v20  ;;  %2520 = vst [vmem:[#allocation13 + $0x10] sm:$0xff] (!%p2925_p11), %v2508_v39 }
 0xb9f   : > { %2513 = vst [vmem:[#allocation2 + $0x18] sm:$0xff] %v2509_v31  ;;  %2521 = vst [vmem:[#allocation13 + $0x18] sm:$0xff] (!%p2925_p11), %v2509_v31 }
 0xba0 PF: > { %p3089_p5 = scmp.eq.s32.totalorder %s3774_s27, 1  ;;  %s3657_s5 = smov [#allocation13]  }
 0xba1   : > { %s2532_s11 = sshll.u32 %s3657_s5, 4  ;;  %s2533_s11 = int_to_ptr.vmem [resolvable:$true] %s2532_s11 }
 0xba2   : > { %s3555_s7 = scalar_lea.vmem %s2533_s11, 512  ;;  %p3562_p6 = scmp.lt.s32.totalorder %s2533_s11, %s2533_s11 }
 0xba3   : > { %p3556_p12 = scmp.ne.s32.totalorder %s2533_s11, %s3555_s7  ;;  %p3563_p9 = scmp.lt.s32.totalorder %s3555_s7, %s3555_s7 }
 0xba5   : > { %p3557_p7 = pnand %p3556_p12, %p3089_p5  ;;  %p3564_p13 = por %p3563_p9, %p3562_p6 }
 0xba7   : > { %p3558_p0 = pneg %p3557_p7 }
 0xba9   : > { %p3565_p10 = pnand %p3564_p13, %p3558_p0 }
 0xbab   : > { %3568 = shalt.err (!%p3565_p10)
}
 0xbac   : > { %s4513_s29 = sld [smem:[#allocation38_spill]] }
 0xbb2   : > { %s3569_s30 = scalar_lea.hbm %s4513_s29, 512 }
 0xbb3   : > { %p3570_p8 = scmp.ne.s32.totalorder %s4513_s29, %s3569_s30  ;;  %p3575_p4 = scmp.lt.u32.totalorder %s3569_s30, %s4513_s29 }
 0xbb5   : > { %p3571_p1 = pnand %p3570_p8, %p3089_p5 }
 0xbb7   : > { %p3572_p3 = pneg %p3571_p1 }
 0xbb9   : > { %p3577_p2 = pnand %p3575_p4, %p3572_p3 }
 0xbbb   : > { %3580 = shalt.err (!%p3577_p2)
}
 0xbbc   : > { %s3658_s8 = smov 128   ;;  %s3659_s17 = smov 8  }
 0xbbd   : > { %3058 = dma.vmem_to_hbm [thread:$0]  (%p3089_p5), %s2533_s11, 512, %s4513_s29, [#allocation5], %s3658_s8, %s3658_s8, %s3659_s17  }
 0xbbe   : > { %3618 = dma.done.wait (%p3089_p5), [#allocation5], 512  }
 0xbbf   : > { %3620 = vsyncadd (%p3089_p5), [#allocation5], 4294966784 }
 0xbc0 PF: > { %s4514_s6 = sld [smem:[#allocation19_spill]]  ;;  %s4515_s0 = sld [smem:[#allocation21_spill]] }
 0xbc1   : > { %s4516_s24 = sld [smem:[#allocation18_spill]]  ;;  %s4517_s25 = sld [smem:[#allocation20_spill]] }
 0xbc2   : > { %s4518_s21 = smov %s3627_s22  ;;  %s4519_s22 = smov %s3631_s23 }
 0xbc6   : > { %s29_s26 = sadd.s32 1, %s4514_s6   ;;  %s4520_s23 = smov %s4515_s0 }
 0xbc7   : > { %p26_p11 = scmp.ge.s32.totalorder %s29_s26, 4  }
 0xbc9   :  { %28 = sbr.rel (!%p26_p11) target bundleno = 23 (0x17), region = 208 }
 0xbd0   :  { %2548 = vsyncpa [#allocation4], 1 }
 0xbd1   :  { %2550 = vsyncpa [#allocation4 + $0x1], 1 }
 0xbd2   :  { %2551 = vsyncpa [#allocation7], 1 }
 0xbd3   :  { %2552 = vsyncpa [#allocation5], 1 }
 0xbd4   :  { %2554 = vsyncpa [#allocation5 + $0x1], 1 }

</bundles_post_ra>
